<compile_context>
chip_gen: v7x
topology: tpu7x:2x2x1
jax: 0.10.0
libtpu: 0.0.40
codegen_flags: <defaults>
</compile_context>

<pallas_src>
import functools

import jax
import jax.numpy as jnp
from jax.experimental import pallas as pl
from jax.experimental.pallas import tpu as pltpu


# ------------------------------------------------------------------ utilities

def _erf(x):
    # Abramowitz & Stegun 7.1.26, max abs error ~1.5e-7 (float32-exact for our
    # purposes).  Uses only exp (EUP) + VPU mul/add/select.
    a1, a2, a3, a4, a5 = (0.254829592, -0.284496736, 1.421413741,
                          -1.453152027, 1.061405429)
    p = 0.3275911
    sgn = jnp.where(x >= 0.0, 1.0, -1.0)
    ax = jnp.abs(x)
    t = 1.0 / (1.0 + p * ax)
    poly = ((((a5 * t + a4) * t + a3) * t + a2) * t + a1) * t
    return sgn * (1.0 - poly * jnp.exp(-ax * ax))


def _gelu_exact(x):
    # PyTorch nn.GELU() default is the exact erf formulation.
    return 0.5 * x * (1.0 + _erf(x * 0.7071067811865476))


def posemb_sincos_2d(h, w, dim, temperature=10000.0):
    # same math as the torch reference (dim must be a multiple of 4)
    assert dim % 4 == 0
    y, x = jnp.meshgrid(jnp.arange(h), jnp.arange(w), indexing="ij")
    omega = jnp.arange(dim // 4) / (dim // 4 - 1)
    omega = 1.0 / (temperature ** omega)
    y = y.reshape(-1)[:, None] * omega[None, :]
    x = x.reshape(-1)[:, None] * omega[None, :]
    pe = jnp.concatenate([jnp.sin(x), jnp.cos(x), jnp.sin(y), jnp.cos(y)], axis=1)
    return pe.astype(jnp.float32)


# ------------------------------------------------------------------ kernels

def transformer_kernel(p_ref, we_ref, pe_ref, wqkv_ref, wo_ref, w1_ref, w2_ref,
                       b2_ref, o_ref, *, heads, dim_head, matmul_dtype):
    """Grid = (batch_blocks, depth).  o_ref is the VMEM-resident residual
    stream: the same output block is revisited across the depth axis."""
    layer = pl.program_id(1)
    Bb, N, dim = o_ref.shape
    inner = heads * dim_head
    M = Bb * N

    # ---- layer 0: fused patch embedding + sincos pos-emb -------------------
    # (replaces the separate embed pallas_call and the x_ref init copy; the
    # residual stream is born directly in the resident output block)
    @pl.when(layer == 0)
    def _():
        pd = p_ref.shape[-1]
        x2d = p_ref[...].reshape(M, pd)                       # bf16 patches
        emb = jnp.dot(x2d, we_ref[...], preferred_element_type=jnp.float32)
        o_ref[...] = emb.reshape(Bb, N, dim) + pe_ref[...][None, :, :]

    xin = o_ref[...]                                          # (Bb, N, dim) f32

    # ---- attention: x = attn(x) + x ----------------------------------------
    x2d = xin.reshape(M, dim).astype(matmul_dtype)
    # Fused full-width QKV projection.  1/sqrt(dim_head) is pre-folded into
    # the Q columns of wqkv by the wrapper (no in-kernel scale multiply).
    qkv = jnp.dot(x2d, wqkv_ref[0],
                  preferred_element_type=jnp.float32).astype(matmul_dtype)

    def to_heads(t2d):
        # (M, inner) -> (heads*Bb, N, dim_head): head-major single batch dim
        # (static lane slices + a major-axis concat; keeps all compute in
        #  batched einsums instead of an unrolled per-head loop).
        parts = [t2d[:, h * dim_head:(h + 1) * dim_head].reshape(Bb, N, dim_head)
                 for h in range(heads)]
        return jnp.concatenate(parts, axis=0)

    qh = to_heads(qkv[:, 0 * inner:1 * inner])
    kh = to_heads(qkv[:, 1 * inner:2 * inner])
    vh = to_heads(qkv[:, 2 * inner:3 * inner])

    # one batched score matmul + one softmax over all heads
    dots = jnp.einsum("bnd,bmd->bnm", qh, kh,
                      preferred_element_type=jnp.float32)     # (heads*Bb, N, N)
    mx = jnp.max(dots, axis=-1, keepdims=True)
    e = jnp.exp(dots - mx)
    attn = e * pl.reciprocal(jnp.sum(e, axis=-1, keepdims=True), approx=True)
    out = jnp.einsum("bnm,bmd->bnd", attn.astype(matmul_dtype), vh,
                     preferred_element_type=jnp.float32)      # (heads*Bb, N, dh)

    # merge heads back onto lanes, then one full-K output projection
    out4 = out.reshape(heads, Bb, N, dim_head)
    cat = jnp.concatenate([out4[h] for h in range(heads)], axis=-1)   # (Bb,N,inner)
    attn_out = jnp.dot(cat.reshape(M, inner).astype(matmul_dtype), wo_ref[0],
                       preferred_element_type=jnp.float32).reshape(Bb, N, dim)
    x_attn = xin + attn_out

    # ---- feed-forward: x = ff(x) + x ----------------------------------------
    h1 = jnp.dot(x_attn.reshape(M, dim).astype(matmul_dtype), w1_ref[0],
                 preferred_element_type=jnp.float32)          # (M, mlp) f32
    g = _gelu_exact(h1).astype(matmul_dtype)
    h2 = jnp.dot(g, w2_ref[0],
                 preferred_element_type=jnp.float32).reshape(Bb, N, dim)
    o_ref[...] = x_attn + h2 + b2_ref[...]                    # bias broadcast


def head_kernel(x_ref, w_ref, o_ref, *, matmul_dtype):
    # mean over tokens, then linear head (no bias); output padded to 128 lanes
    m = jnp.mean(x_ref[...], axis=1)                          # (bb, dim) f32
    o_ref[...] = jnp.dot(m.astype(matmul_dtype), w_ref[...],
                         preferred_element_type=jnp.float32)


# ------------------------------------------------------------------ wrapper

def vit_forward(img, params, *, patch_size, heads, dim_head,
                batch_block=None, matmul_dtype=jnp.bfloat16,
                vmem_budget_bytes=40 << 20):
    B, C, H, W = img.shape
    p = patch_size
    h, w = H // p, W // p
    N = h * w
    dim = params["w_embed"].shape[1]
    mlp = params["w1"].shape[2]
    inner = heads * dim_head
    n_cls = params["w_head"].shape[1]
    patch_dim = p * p * C
    depth = params["wqkv"].shape[0]

    # --- weight preprocessing (once, outside the grid loop) -----------------
    #  * fold 1/sqrt(dim_head) into the Q columns of wqkv
    #  * cast matmul weights to bf16 (halves weight DMA / VMEM); bias stays f32
    scale = dim_head ** -0.5
    wqkv = params["wqkv"].at[:, :, :inner].multiply(scale).astype(matmul_dtype)
    w_embed = params["w_embed"].astype(matmul_dtype)
    wo = params["wo"].astype(matmul_dtype)
    w1 = params["w1"].astype(matmul_dtype)
    w2 = params["w2"].astype(matmul_dtype)
    b2 = params["b2"].astype(jnp.float32).reshape(depth, 1, dim)

    # layout glue: 'b c (h p1) (w p2) -> b (h w) (p1 p2 c)', emitted as bf16
    patches = (img.reshape(B, C, h, p, w, p)
                  .transpose(0, 2, 4, 3, 5, 1)
                  .reshape(B, N, patch_dim)).astype(matmul_dtype)
    pe = posemb_sincos_2d(h, w, dim)

    # --- VMEM budget per batch block (double-buffered blocks + intermediates)
    def est_bytes(bb):
        wts = (dim * 3 * inner + inner * dim + dim * mlp + mlp * dim) * 2 + dim * 4
        fixed = 2 * (bb * N * patch_dim * 2 + patch_dim * dim * 2 + N * dim * 4)
        resid = 2 * bb * N * dim * 4
        inter = (bb * N * 3 * inner * 4          # qkv (f32 accum)
                 + 3 * bb * N * inner * 2        # head-stacked q/k/v (bf16)
                 + 2 * heads * bb * N * N * 4    # scores + probs
                 + bb * N * inner * 4            # merged attn output
                 + bb * N * mlp * 4              # h1
                 + 3 * bb * N * dim * 4)         # x_attn / h2 / result
        return fixed + 2 * wts + resid + inter

    if batch_block is None:
        batch_block = 1
        for cand in range(1, B + 1):
            if (B % cand == 0 and cand * N <= 4096
                    and est_bytes(cand) <= vmem_budget_bytes):
                batch_block = cand
    assert B % batch_block == 0
    # explicit scoped-VMEM limit derived from the chosen block sizes
    # (kept <= 60 MiB so the same choice is legal on v7x's 64 MiB VMEM)
    vmem_limit = int(min(max(est_bytes(batch_block) * 5 // 4, 16 << 20), 60 << 20))

    tokens = pl.pallas_call(
        functools.partial(transformer_kernel, heads=heads, dim_head=dim_head,
                          matmul_dtype=matmul_dtype),
        out_shape=jax.ShapeDtypeStruct((B, N, dim), jnp.float32),
        grid=(B // batch_block, depth),
        in_specs=[
            pl.BlockSpec((batch_block, N, patch_dim), lambda b, l: (b, 0, 0)),
            pl.BlockSpec((patch_dim, dim), lambda b, l: (0, 0)),
            pl.BlockSpec((N, dim), lambda b, l: (0, 0)),
            pl.BlockSpec((1, dim, 3 * inner), lambda b, l: (l, 0, 0)),
            pl.BlockSpec((1, inner, dim), lambda b, l: (l, 0, 0)),
            pl.BlockSpec((1, dim, mlp), lambda b, l: (l, 0, 0)),
            pl.BlockSpec((1, mlp, dim), lambda b, l: (l, 0, 0)),
            pl.BlockSpec((1, 1, dim), lambda b, l: (l, 0, 0)),
        ],
        out_specs=pl.BlockSpec((batch_block, N, dim), lambda b, l: (b, 0, 0)),
        compiler_params=pltpu.CompilerParams(
            dimension_semantics=("parallel", "arbitrary"),
            vmem_limit_bytes=vmem_limit),
    )(patches, w_embed, pe, wqkv, wo, w1, w2, b2)

    # --- classifier head: mean-pool + linear, tiled over batch --------------
    n_pad = pl.cdiv(n_cls, 128) * 128                # lane-dense output
    w_head = jnp.pad(params["w_head"],
                     ((0, 0), (0, n_pad - n_cls))).astype(matmul_dtype)

    # output block's 2nd-minor dim must be a multiple of 8 or the full batch
    cands = [d for d in range(1, B + 1)
             if B % d == 0 and (d == B or d % 8 == 0)]
    fits = [d for d in cands
            if 2 * d * N * dim * 4 + dim * n_pad * 2 + 2 * d * n_pad * 4
            <= vmem_budget_bytes]
    bb_head = max(fits) if fits else min(cands)

    logits = pl.pallas_call(
        functools.partial(head_kernel, matmul_dtype=matmul_dtype),
        out_shape=jax.ShapeDtypeStruct((B, n_pad), jnp.float32),
        grid=(B // bb_head,),
        in_specs=[
            pl.BlockSpec((bb_head, N, dim), lambda b: (b, 0, 0)),
            pl.BlockSpec((dim, n_pad), lambda b: (0, 0)),
        ],
        out_specs=pl.BlockSpec((bb_head, n_pad), lambda b: (b, 0)),
        compiler_params=pltpu.CompilerParams(dimension_semantics=("parallel",)),
    )(tokens, w_head)
    return logits[:, :n_cls]


# ------------------------------------------------------------------ main

if __name__ == "__main__":
    # small ViT config consistent with the module's constructor
    B, C, IMG, P = 2, 3, 16, 4
    DIM, DEPTH, HEADS, DIM_HEAD, MLP, NCLS = 128, 2, 4, 32, 128, 10
    INNER = HEADS * DIM_HEAD
    PATCH_DIM = C * P * P

    key = jax.random.PRNGKey(0)
    k_img, k0, k1, k2, k3, k4, k5, k6 = jax.random.split(key, 8)
    s = 0.02
    params = dict(
        w_embed=jax.random.normal(k0, (PATCH_DIM, DIM), jnp.float32) * s,
        wqkv=jax.random.normal(k1, (DEPTH, DIM, 3 * INNER), jnp.float32) * s,
        wo=jax.random.normal(k2, (DEPTH, INNER, DIM), jnp.float32) * s,
        w1=jax.random.normal(k3, (DEPTH, DIM, MLP), jnp.float32) * s,
        w2=jax.random.normal(k4, (DEPTH, MLP, DIM), jnp.float32) * s,
        b2=jax.random.normal(k5, (DEPTH, 1, DIM), jnp.float32) * s,
        w_head=jax.random.normal(k6, (DIM, NCLS), jnp.float32) * s,
    )
    img = jax.random.normal(k_img, (B, C, IMG, IMG), jnp.float32)

    out = vit_forward(img, params, patch_size=P, heads=HEADS, dim_head=DIM_HEAD)
    out = jax.block_until_ready(out)
    assert out.shape == (B, NCLS) and out.dtype == jnp.float32
    print("KERNEL_OK")
</pallas_src>

<mosaic_0001>
module attributes {stable_mosaic.version = 11 : i64} {
  func.func @transformer_kernel(%arg0: i32, %arg1: i32, %arg2: memref<2x16x48xbf16, #tpu.memory_space<vmem>>, %arg3: memref<48x128xbf16, #tpu.memory_space<vmem>>, %arg4: memref<16x128xf32, #tpu.memory_space<vmem>>, %arg5: memref<1x128x384xbf16, #tpu.memory_space<vmem>>, %arg6: memref<1x128x128xbf16, #tpu.memory_space<vmem>>, %arg7: memref<1x128x128xbf16, #tpu.memory_space<vmem>>, %arg8: memref<1x128x128xbf16, #tpu.memory_space<vmem>>, %arg9: memref<1x1x128xf32, #tpu.memory_space<vmem>>, %arg10: memref<2x16x128xf32, #tpu.memory_space<vmem>>) attributes {dimension_semantics = [#tpu.dimension_semantics<parallel>, #tpu.dimension_semantics<arbitrary>], iteration_bounds = array<i64: 1, 2>, scalar_prefetch = 0 : i64, scratch_operands = 0 : i64, tpu.core_type = #tpu.core_type<tc>, window_params = [{transform_indices = @transform_0, window_bounds = array<i64: 2, 16, 48>}, {pipeline_mode = #tpu.pipeline_mode<synchronous>, transform_indices = @transform_1, window_bounds = array<i64: 48, 128>}, {pipeline_mode = #tpu.pipeline_mode<synchronous>, transform_indices = @transform_2, window_bounds = array<i64: 16, 128>}, {transform_indices = @transform_3, window_bounds = array<i64: 1, 128, 384>}, {transform_indices = @transform_4, window_bounds = array<i64: 1, 128, 128>}, {transform_indices = @transform_5, window_bounds = array<i64: 1, 128, 128>}, {transform_indices = @transform_6, window_bounds = array<i64: 1, 128, 128>}, {transform_indices = @transform_7, window_bounds = array<i64: 1, 1, 128>}, {transform_indices = @transform_8, window_bounds = array<i64: 2, 16, 128>}]} {
    %c0_i32 = arith.constant 0 : i32
    %0 = arith.cmpi eq, %arg1, %c0_i32 : i32
    %1 = arith.extui %0 : i1 to i32
    %c0_i32_0 = arith.constant 0 : i32
    %2 = arith.cmpi ne, %1, %c0_i32_0 : i32
    scf.if %2 {
      %c0_44 = arith.constant 0 : index
      %c0_45 = arith.constant 0 : index
      %c0_46 = arith.constant 0 : index
      %126 = vector.load %arg2[%c0_44, %c0_45, %c0_46] : memref<2x16x48xbf16, #tpu.memory_space<vmem>>, vector<2x16x48xbf16>
      %127 = vector.shape_cast %126 : vector<2x16x48xbf16> to vector<32x48xbf16>
      %c0_47 = arith.constant 0 : index
      %c0_48 = arith.constant 0 : index
      %128 = vector.load %arg3[%c0_47, %c0_48] : memref<48x128xbf16, #tpu.memory_space<vmem>>, vector<48x128xbf16>
      %cst_49 = arith.constant dense<0.000000e+00> : vector<32x128xf32>
      %129 = tpu.matmul %127, %128, %cst_49 {dimension_numbers = #tpu.dot_dimension_numbers<[1], [0], [0], [1], [0, 0, 1, 1], [], []>} : vector<32x48xbf16>, vector<48x128xbf16>, vector<32x128xf32> -> vector<32x128xf32>
      %130 = vector.shape_cast %129 : vector<32x128xf32> to vector<2x16x128xf32>
      %c0_50 = arith.constant 0 : index
      %c0_51 = arith.constant 0 : index
      %131 = vector.load %arg4[%c0_50, %c0_51] : memref<16x128xf32, #tpu.memory_space<vmem>>, vector<16x128xf32>
      %132 = vector.shape_cast %131 : vector<16x128xf32> to vector<1x16x128xf32>
      %133 = vector.broadcast %132 : vector<1x16x128xf32> to vector<2x16x128xf32>
      %134 = arith.addf %130, %133 : vector<2x16x128xf32>
      %c0_52 = arith.constant 0 : index
      %c0_53 = arith.constant 0 : index
      %c0_54 = arith.constant 0 : index
      %135 = vector.load %arg10[%c0_52, %c0_53, %c0_54] : memref<2x16x128xf32, #tpu.memory_space<vmem>>, vector<2x16x128xf32>
      tpu.vector_store %arg10[%c0_52, %c0_53, %c0_54], %134 {strides = array<i32>} : memref<2x16x128xf32, #tpu.memory_space<vmem>>, vector<2x16x128xf32>,
    } else {
    }
    %c0 = arith.constant 0 : index
    %c0_1 = arith.constant 0 : index
    %c0_2 = arith.constant 0 : index
    %3 = vector.load %arg10[%c0, %c0_1, %c0_2] : memref<2x16x128xf32, #tpu.memory_space<vmem>>, vector<2x16x128xf32>
    %4 = vector.shape_cast %3 : vector<2x16x128xf32> to vector<32x128xf32>
    %5 = arith.truncf %4 : vector<32x128xf32> to vector<32x128xbf16>
    %c0_3 = arith.constant 0 : index
    %c0_4 = arith.constant 0 : index
    %c0_5 = arith.constant 0 : index
    %6 = vector.load %arg5[%c0_3, %c0_4, %c0_5] : memref<1x128x384xbf16, #tpu.memory_space<vmem>>, vector<1x128x384xbf16>
    %7 = vector.shape_cast %6 : vector<1x128x384xbf16> to vector<128x384xbf16>
    %cst = arith.constant dense<0.000000e+00> : vector<32x384xf32>
    %8 = tpu.matmul %5, %7, %cst {dimension_numbers = #tpu.dot_dimension_numbers<[1], [0], [0], [1], [0, 0, 1, 1], [], []>} : vector<32x128xbf16>, vector<128x384xbf16>, vector<32x384xf32> -> vector<32x384xf32>
    %9 = arith.truncf %8 : vector<32x384xf32> to vector<32x384xbf16>
    %10 = vector.extract_strided_slice %9 {offsets = [0, 0], sizes = [32, 128], strides = [1, 1]} : vector<32x384xbf16> to vector<32x128xbf16>
    %11 = vector.extract_strided_slice %10 {offsets = [0, 0], sizes = [32, 32], strides = [1, 1]} : vector<32x128xbf16> to vector<32x32xbf16>
    %12 = vector.shape_cast %11 : vector<32x32xbf16> to vector<2x16x32xbf16>
    %13 = vector.extract_strided_slice %10 {offsets = [0, 32], sizes = [32, 32], strides = [1, 1]} : vector<32x128xbf16> to vector<32x32xbf16>
    %14 = vector.shape_cast %13 : vector<32x32xbf16> to vector<2x16x32xbf16>
    %15 = vector.extract_strided_slice %10 {offsets = [0, 64], sizes = [32, 32], strides = [1, 1]} : vector<32x128xbf16> to vector<32x32xbf16>
    %16 = vector.shape_cast %15 : vector<32x32xbf16> to vector<2x16x32xbf16>
    %17 = vector.extract_strided_slice %10 {offsets = [0, 96], sizes = [32, 32], strides = [1, 1]} : vector<32x128xbf16> to vector<32x32xbf16>
    %18 = vector.shape_cast %17 : vector<32x32xbf16> to vector<2x16x32xbf16>
    %19 = tpu.concatenate %12, %14, %16, %18 in 0 : vector<2x16x32xbf16>, vector<2x16x32xbf16>, vector<2x16x32xbf16>, vector<2x16x32xbf16> -> vector<8x16x32xbf16>
    %20 = vector.extract_strided_slice %9 {offsets = [0, 128], sizes = [32, 128], strides = [1, 1]} : vector<32x384xbf16> to vector<32x128xbf16>
    %21 = vector.extract_strided_slice %20 {offsets = [0, 0], sizes = [32, 32], strides = [1, 1]} : vector<32x128xbf16> to vector<32x32xbf16>
    %22 = vector.shape_cast %21 : vector<32x32xbf16> to vector<2x16x32xbf16>
    %23 = vector.extract_strided_slice %20 {offsets = [0, 32], sizes = [32, 32], strides = [1, 1]} : vector<32x128xbf16> to vector<32x32xbf16>
    %24 = vector.shape_cast %23 : vector<32x32xbf16> to vector<2x16x32xbf16>
    %25 = vector.extract_strided_slice %20 {offsets = [0, 64], sizes = [32, 32], strides = [1, 1]} : vector<32x128xbf16> to vector<32x32xbf16>
    %26 = vector.shape_cast %25 : vector<32x32xbf16> to vector<2x16x32xbf16>
    %27 = vector.extract_strided_slice %20 {offsets = [0, 96], sizes = [32, 32], strides = [1, 1]} : vector<32x128xbf16> to vector<32x32xbf16>
    %28 = vector.shape_cast %27 : vector<32x32xbf16> to vector<2x16x32xbf16>
    %29 = tpu.concatenate %22, %24, %26, %28 in 0 : vector<2x16x32xbf16>, vector<2x16x32xbf16>, vector<2x16x32xbf16>, vector<2x16x32xbf16> -> vector<8x16x32xbf16>
    %30 = vector.extract_strided_slice %9 {offsets = [0, 256], sizes = [32, 128], strides = [1, 1]} : vector<32x384xbf16> to vector<32x128xbf16>
    %31 = vector.extract_strided_slice %30 {offsets = [0, 0], sizes = [32, 32], strides = [1, 1]} : vector<32x128xbf16> to vector<32x32xbf16>
    %32 = vector.shape_cast %31 : vector<32x32xbf16> to vector<2x16x32xbf16>
    %33 = vector.extract_strided_slice %30 {offsets = [0, 32], sizes = [32, 32], strides = [1, 1]} : vector<32x128xbf16> to vector<32x32xbf16>
    %34 = vector.shape_cast %33 : vector<32x32xbf16> to vector<2x16x32xbf16>
    %35 = vector.extract_strided_slice %30 {offsets = [0, 64], sizes = [32, 32], strides = [1, 1]} : vector<32x128xbf16> to vector<32x32xbf16>
    %36 = vector.shape_cast %35 : vector<32x32xbf16> to vector<2x16x32xbf16>
    %37 = vector.extract_strided_slice %30 {offsets = [0, 96], sizes = [32, 32], strides = [1, 1]} : vector<32x128xbf16> to vector<32x32xbf16>
    %38 = vector.shape_cast %37 : vector<32x32xbf16> to vector<2x16x32xbf16>
    %39 = tpu.concatenate %32, %34, %36, %38 in 0 : vector<2x16x32xbf16>, vector<2x16x32xbf16>, vector<2x16x32xbf16>, vector<2x16x32xbf16> -> vector<8x16x32xbf16>
    "tpu.trace_start"() <{level = 10 : i32, message = "bnd,bmd->bnm"}> : () -> ()
    %cst_6 = arith.constant dense<0.000000e+00> : vector<8x16x16xf32>
    %40 = tpu.matmul %19, %29, %cst_6 {dimension_numbers = #tpu.dot_dimension_numbers<[2], [2], [1], [1], [0, 0, 0, 1, 1, 1], [0], [0]>} : vector<8x16x32xbf16>, vector<8x16x32xbf16>, vector<8x16x16xf32> -> vector<8x16x16xf32>
    "tpu.trace_stop"() : () -> ()
    %cst_7 = arith.constant dense<0xFF800000> : vector<8x16xf32>
    %41 = vector.multi_reduction <maximumf>, %40, %cst_7 [2] : vector<8x16x16xf32> to vector<8x16xf32>
    %42 = vector.shape_cast %41 : vector<8x16xf32> to vector<8x16x1xf32>
    %43 = vector.broadcast %42 : vector<8x16x1xf32> to vector<8x16x16xf32>
    %44 = arith.subf %40, %43 : vector<8x16x16xf32>
    %45 = math.exp %44 : vector<8x16x16xf32>
    %cst_8 = arith.constant dense<0.000000e+00> : vector<8x16xf32>
    %46 = vector.multi_reduction <add>, %45, %cst_8 [2] : vector<8x16x16xf32> to vector<8x16xf32>
    %47 = vector.shape_cast %46 : vector<8x16xf32> to vector<8x16x1xf32>
    %48 = tpu.reciprocal %47 {approx = true} : vector<8x16x1xf32> -> vector<8x16x1xf32>
    %49 = vector.broadcast %48 : vector<8x16x1xf32> to vector<8x16x16xf32>
    %50 = arith.mulf %45, %49 : vector<8x16x16xf32>
    %51 = arith.truncf %50 : vector<8x16x16xf32> to vector<8x16x16xbf16>
    "tpu.trace_start"() <{level = 10 : i32, message = "bnm,bmd->bnd"}> : () -> ()
    %cst_9 = arith.constant dense<0.000000e+00> : vector<8x16x32xf32>
    %52 = tpu.matmul %51, %39, %cst_9 {dimension_numbers = #tpu.dot_dimension_numbers<[2], [1], [1], [2], [0, 0, 0, 1, 1, 2], [0], [0]>} : vector<8x16x16xbf16>, vector<8x16x32xbf16>, vector<8x16x32xf32> -> vector<8x16x32xf32>
    "tpu.trace_stop"() : () -> ()
    %53 = vector.shape_cast %52 : vector<8x16x32xf32> to vector<4x2x16x32xf32>
    %54 = vector.extract_strided_slice %53 {offsets = [0, 0, 0, 0], sizes = [1, 2, 16, 32], strides = [1, 1, 1, 1]} : vector<4x2x16x32xf32> to vector<1x2x16x32xf32>
    %55 = vector.shape_cast %54 : vector<1x2x16x32xf32> to vector<2x16x32xf32>
    %56 = vector.extract_strided_slice %53 {offsets = [1, 0, 0, 0], sizes = [1, 2, 16, 32], strides = [1, 1, 1, 1]} : vector<4x2x16x32xf32> to vector<1x2x16x32xf32>
    %57 = vector.shape_cast %56 : vector<1x2x16x32xf32> to vector<2x16x32xf32>
    %58 = vector.extract_strided_slice %53 {offsets = [2, 0, 0, 0], sizes = [1, 2, 16, 32], strides = [1, 1, 1, 1]} : vector<4x2x16x32xf32> to vector<1x2x16x32xf32>
    %59 = vector.shape_cast %58 : vector<1x2x16x32xf32> to vector<2x16x32xf32>
    %60 = vector.extract_strided_slice %53 {offsets = [3, 0, 0, 0], sizes = [1, 2, 16, 32], strides = [1, 1, 1, 1]} : vector<4x2x16x32xf32> to vector<1x2x16x32xf32>
    %61 = vector.shape_cast %60 : vector<1x2x16x32xf32> to vector<2x16x32xf32>
    %62 = tpu.concatenate %55, %57, %59, %61 in 2 : vector<2x16x32xf32>, vector<2x16x32xf32>, vector<2x16x32xf32>, vector<2x16x32xf32> -> vector<2x16x128xf32>
    %63 = vector.shape_cast %62 : vector<2x16x128xf32> to vector<32x128xf32>
    %64 = arith.truncf %63 : vector<32x128xf32> to vector<32x128xbf16>
    %c0_10 = arith.constant 0 : index
    %c0_11 = arith.constant 0 : index
    %c0_12 = arith.constant 0 : index
    %65 = vector.load %arg6[%c0_10, %c0_11, %c0_12] : memref<1x128x128xbf16, #tpu.memory_space<vmem>>, vector<1x128x128xbf16>
    %66 = vector.shape_cast %65 : vector<1x128x128xbf16> to vector<128x128xbf16>
    %cst_13 = arith.constant dense<0.000000e+00> : vector<32x128xf32>
    %67 = tpu.matmul %64, %66, %cst_13 {dimension_numbers = #tpu.dot_dimension_numbers<[1], [0], [0], [1], [0, 0, 1, 1], [], []>} : vector<32x128xbf16>, vector<128x128xbf16>, vector<32x128xf32> -> vector<32x128xf32>
    %68 = vector.shape_cast %67 : vector<32x128xf32> to vector<2x16x128xf32>
    %69 = arith.addf %3, %68 : vector<2x16x128xf32>
    %70 = vector.shape_cast %69 : vector<2x16x128xf32> to vector<32x128xf32>
    %71 = arith.truncf %70 : vector<32x128xf32> to vector<32x128xbf16>
    %c0_14 = arith.constant 0 : index
    %c0_15 = arith.constant 0 : index
    %c0_16 = arith.constant 0 : index
    %72 = vector.load %arg7[%c0_14, %c0_15, %c0_16] : memref<1x128x128xbf16, #tpu.memory_space<vmem>>, vector<1x128x128xbf16>
    %73 = vector.shape_cast %72 : vector<1x128x128xbf16> to vector<128x128xbf16>
    %cst_17 = arith.constant dense<0.000000e+00> : vector<32x128xf32>
    %74 = tpu.matmul %71, %73, %cst_17 {dimension_numbers = #tpu.dot_dimension_numbers<[1], [0], [0], [1], [0, 0, 1, 1], [], []>} : vector<32x128xbf16>, vector<128x128xbf16>, vector<32x128xf32> -> vector<32x128xf32>
    %cst_18 = arith.constant 5.000000e-01 : f32
    %75 = vector.broadcast %cst_18 : f32 to vector<32x128xf32>
    %76 = arith.mulf %75, %74 : vector<32x128xf32>
    %cst_19 = arith.constant 0.707106769 : f32
    %77 = vector.broadcast %cst_19 : f32 to vector<32x128xf32>
    %78 = arith.mulf %74, %77 : vector<32x128xf32>
    %cst_20 = arith.constant 0.000000e+00 : f32
    %79 = vector.broadcast %cst_20 : f32 to vector<32x128xf32>
    %80 = arith.cmpf oge, %78, %79 : vector<32x128xf32>
    %cst_21 = arith.constant 1.000000e+00 : f32
    %cst_22 = arith.constant -1.000000e+00 : f32
    %81 = vector.broadcast %cst_21 : f32 to vector<32x128xf32>
    %82 = vector.broadcast %cst_22 : f32 to vector<32x128xf32>
    %83 = arith.select %80, %81, %82 : vector<32x128xi1>, vector<32x128xf32>
    %84 = math.absf %78 : vector<32x128xf32>
    %cst_23 = arith.constant 0.327591091 : f32
    %85 = vector.broadcast %cst_23 : f32 to vector<32x128xf32>
    %86 = arith.mulf %85, %84 : vector<32x128xf32>
    %cst_24 = arith.constant 1.000000e+00 : f32
    %87 = vector.broadcast %cst_24 : f32 to vector<32x128xf32>
    %88 = arith.addf %87, %86 : vector<32x128xf32>
    %cst_25 = arith.constant 1.000000e+00 : f32
    %89 = vector.broadcast %cst_25 : f32 to vector<32x128xf32>
    %90 = arith.divf %89, %88 : vector<32x128xf32>
    %cst_26 = arith.constant 1.06140542 : f32
    %91 = vector.broadcast %cst_26 : f32 to vector<32x128xf32>
    %92 = arith.mulf %91, %90 : vector<32x128xf32>
    %cst_27 = arith.constant -1.45315206 : f32
    %93 = vector.broadcast %cst_27 : f32 to vector<32x128xf32>
    %94 = arith.addf %92, %93 : vector<32x128xf32>
    %95 = arith.mulf %94, %90 : vector<32x128xf32>
    %cst_28 = arith.constant 1.42141378 : f32
    %96 = vector.broadcast %cst_28 : f32 to vector<32x128xf32>
    %97 = arith.addf %95, %96 : vector<32x128xf32>
    %98 = arith.mulf %97, %90 : vector<32x128xf32>
    %cst_29 = arith.constant -0.284496725 : f32
    %99 = vector.broadcast %cst_29 : f32 to vector<32x128xf32>
    %100 = arith.addf %98, %99 : vector<32x128xf32>
    %101 = arith.mulf %100, %90 : vector<32x128xf32>
    %cst_30 = arith.constant 0.254829586 : f32
    %102 = vector.broadcast %cst_30 : f32 to vector<32x128xf32>
    %103 = arith.addf %101, %102 : vector<32x128xf32>
    %104 = arith.mulf %103, %90 : vector<32x128xf32>
    %cst_31 = arith.constant 0.000000e+00 : f32
    %105 = vector.broadcast %cst_31 : f32 to vector<32x128xf32>
    %106 = arith.subf %105, %84 : vector<32x128xf32>
    %107 = arith.mulf %106, %84 : vector<32x128xf32>
    %108 = math.exp %107 : vector<32x128xf32>
    %109 = arith.mulf %104, %108 : vector<32x128xf32>
    %cst_32 = arith.constant 1.000000e+00 : f32
    %110 = vector.broadcast %cst_32 : f32 to vector<32x128xf32>
    %111 = arith.subf %110, %109 : vector<32x128xf32>
    %112 = arith.mulf %83, %111 : vector<32x128xf32>
    %cst_33 = arith.constant 1.000000e+00 : f32
    %113 = vector.broadcast %cst_33 : f32 to vector<32x128xf32>
    %114 = arith.addf %113, %112 : vector<32x128xf32>
    %115 = arith.mulf %76, %114 : vector<32x128xf32>
    %116 = arith.truncf %115 : vector<32x128xf32> to vector<32x128xbf16>
    %c0_34 = arith.constant 0 : index
    %c0_35 = arith.constant 0 : index
    %c0_36 = arith.constant 0 : index
    %117 = vector.load %arg8[%c0_34, %c0_35, %c0_36] : memref<1x128x128xbf16, #tpu.memory_space<vmem>>, vector<1x128x128xbf16>
    %118 = vector.shape_cast %117 : vector<1x128x128xbf16> to vector<128x128xbf16>
    %cst_37 = arith.constant dense<0.000000e+00> : vector<32x128xf32>
    %119 = tpu.matmul %116, %118, %cst_37 {dimension_numbers = #tpu.dot_dimension_numbers<[1], [0], [0], [1], [0, 0, 1, 1], [], []>} : vector<32x128xbf16>, vector<128x128xbf16>, vector<32x128xf32> -> vector<32x128xf32>
    %120 = vector.shape_cast %119 : vector<32x128xf32> to vector<2x16x128xf32>
    %121 = arith.addf %69, %120 : vector<2x16x128xf32>
    %c0_38 = arith.constant 0 : index
    %c0_39 = arith.constant 0 : index
    %c0_40 = arith.constant 0 : index
    %122 = vector.load %arg9[%c0_38, %c0_39, %c0_40] : memref<1x1x128xf32, #tpu.memory_space<vmem>>, vector<1x1x128xf32>
    %123 = vector.broadcast %122 : vector<1x1x128xf32> to vector<2x16x128xf32>
    %124 = arith.addf %121, %123 : vector<2x16x128xf32>
    %c0_41 = arith.constant 0 : index
    %c0_42 = arith.constant 0 : index
    %c0_43 = arith.constant 0 : index
    %125 = vector.load %arg10[%c0_41, %c0_42, %c0_43] : memref<2x16x128xf32, #tpu.memory_space<vmem>>, vector<2x16x128xf32>
    tpu.vector_store %arg10[%c0_41, %c0_42, %c0_43], %124 {strides = array<i32>} : memref<2x16x128xf32, #tpu.memory_space<vmem>>, vector<2x16x128xf32>,
    return
  }
  func.func @transform_0(%arg0: i32, %arg1: i32) -> (i32, i32, i32) {
    %c0_i32 = arith.constant 0 : i32
    %c0_i32_0 = arith.constant 0 : i32
    %c0_i32_1 = arith.constant 0 : i32
    return %arg0, %c0_i32, %c0_i32_0 : i32, i32, i32
  }
  func.func @transform_1(%arg0: i32, %arg1: i32) -> (i32, i32) {
    %c0_i32 = arith.constant 0 : i32
    %c0_i32_0 = arith.constant 0 : i32
    %c0_i32_1 = arith.constant 0 : i32
    return %c0_i32, %c0_i32_0 : i32, i32
  }
  func.func @transform_2(%arg0: i32, %arg1: i32) -> (i32, i32) {
    %c0_i32 = arith.constant 0 : i32
    %c0_i32_0 = arith.constant 0 : i32
    %c0_i32_1 = arith.constant 0 : i32
    return %c0_i32, %c0_i32_0 : i32, i32
  }
  func.func @transform_3(%arg0: i32, %arg1: i32) -> (i32, i32, i32) {
    %c0_i32 = arith.constant 0 : i32
    %c0_i32_0 = arith.constant 0 : i32
    %c0_i32_1 = arith.constant 0 : i32
    return %arg1, %c0_i32, %c0_i32_0 : i32, i32, i32
  }
  func.func @transform_4(%arg0: i32, %arg1: i32) -> (i32, i32, i32) {
    %c0_i32 = arith.constant 0 : i32
    %c0_i32_0 = arith.constant 0 : i32
    %c0_i32_1 = arith.constant 0 : i32
    return %arg1, %c0_i32, %c0_i32_0 : i32, i32, i32
  }
  func.func @transform_5(%arg0: i32, %arg1: i32) -> (i32, i32, i32) {
    %c0_i32 = arith.constant 0 : i32
    %c0_i32_0 = arith.constant 0 : i32
    %c0_i32_1 = arith.constant 0 : i32
    return %arg1, %c0_i32, %c0_i32_0 : i32, i32, i32
  }
  func.func @transform_6(%arg0: i32, %arg1: i32) -> (i32, i32, i32) {
    %c0_i32 = arith.constant 0 : i32
    %c0_i32_0 = arith.constant 0 : i32
    %c0_i32_1 = arith.constant 0 : i32
    return %arg1, %c0_i32, %c0_i32_0 : i32, i32, i32
  }
  func.func @transform_7(%arg0: i32, %arg1: i32) -> (i32, i32, i32) {
    %c0_i32 = arith.constant 0 : i32
    %c0_i32_0 = arith.constant 0 : i32
    %c0_i32_1 = arith.constant 0 : i32
    return %arg1, %c0_i32, %c0_i32_0 : i32, i32, i32
  }
  func.func @transform_8(%arg0: i32, %arg1: i32) -> (i32, i32, i32) {
    %c0_i32 = arith.constant 0 : i32
    %c0_i32_0 = arith.constant 0 : i32
    %c0_i32_1 = arith.constant 0 : i32
    return %arg0, %c0_i32, %c0_i32_0 : i32, i32, i32
  }
}

</mosaic_0001>

<bundles_post_ra>
// kernel: tpu_custom_call.1
= control target key start
LH: loop header
LB: loop body
LE: loop exit
PB: predicated region body
PF: predicated region fallthrough
CT: control target
= control target key end

     0   :  { %s4377_s0 = inlined_call_operand.hbm [shape: bf16[2,16,48], index: 0, kind: input, shape index: {}]   ;;  %s4378_s1 = inlined_call_operand.hbm [shape: bf16[48,128], index: 1, kind: input, shape index: {}]   ;;  %s4379_s2 = inlined_call_operand.hbm [shape: f32[16,128], index: 2, kind: input, shape index: {}]   ;;  %s4380_s3 = inlined_call_operand.hbm [shape: bf16[2,128,384], index: 3, kind: input, shape index: {}]   ;;  %s4381_s4 = inlined_call_operand.hbm [shape: bf16[2,128,128], index: 4, kind: input, shape index: {}]   ;;  %s4382_s5 = inlined_call_operand.hbm [shape: bf16[2,128,128], index: 5, kind: input, shape index: {}]   ;;  %s4383_s6 = inlined_call_operand.hbm [shape: bf16[2,128,128], index: 6, kind: input, shape index: {}]   ;;  %s4384_s7 = inlined_call_operand.vmem [shape: f32[2,1,128], index: 7, kind: input, shape index: {}]   ;;  %s4385_s8 = inlined_call_operand.hbm [shape: f32[2,16,128], index: 8, kind: output, shape index: {}]  }
   0x1   :  { %4405 = sst [smem:[#allocation25_spill]] %s4378_s1 }
   0x2   :  { %4406 = sst [smem:[#allocation26_spill]] %s4380_s3 }
   0x3   :  { %4407 = sst [smem:[#allocation27_spill]] %s4382_s5 }
   0x4   :  { %4408 = sst [smem:[#allocation28_spill]] %s4384_s7 }
   0x5   :  { %4409 = sst [smem:[#allocation29_spill]] %s4385_s8 }
   0x6   :  { %13 = vsyncpa [#allocation3], 0 }
   0x7   :  { %14 = vsyncpa [#allocation6], 0 }
   0x8   :  { %15 = vsyncpa [#allocation9], 0 }
   0x9   :  { %17 = vsyncpa [#allocation9 + $0x1], 0 }
   0xa   :  { %18 = vsyncpa [#allocation12], 0 }
   0xb   :  { %20 = vsyncpa [#allocation12 + $0x1], 0 }
   0xc   :  { %21 = vsyncpa [#allocation4], 0  ;;  %s3607_s27 = smov 0   ;;  %s3609_s28 = smov 0  }
   0xd   :  { %s3611_s29 = smov 0   ;;  %s3613_s30 = smov 0  }
   0xe   :  { %s3615_s9 = smov 0   ;;  %s3617_s10 = smov 0  }
   0xf LB: > { %4410 = sst [smem:[#allocation20_spill]] %s3525_s29  ;;  %s3636_s11 = sadd.s32 4294967295, %s3537_s10   ;;  %s3537_s10 = sphi %s3617_s10, %s27_s10   ;;  %s3533_s9 = sphi %s3615_s9, %s4444_s9   ;;  %s3529_s30 = sphi %s3613_s30, %s4443_s30   ;;  %s3525_s29 = sphi %s3611_s29, %s4442_s29   ;;  %s3521_s28 = sphi %s3609_s28, %s4446_s28   ;;  %s3517_s27 = sphi %s3607_s27, %s4445_s27  }
  0x10   : > { %4411 = sst [smem:[#allocation21_spill]] %s3533_s9  ;;  %p127_p0 = scmp.ne.s32.totalorder %s3521_s28, %s3517_s27 }
  0x11   : > { %4412 = sst [smem:[#allocation22_spill]] %s3537_s10  ;;  %p4386_p1 = scmp.eq.s32.totalorder %s3636_s11, 0 }
  0x12   : > { %p2575_p2 = scmp.ge.s32.totalorder %s3537_s10, 1  ;;  %p268_p3 = scmp.lt.s32.totalorder %s3537_s10, 3 }
  0x13   : > { %p3644_p4 = por %p4386_p1, %p127_p0  ;;  %s3539_s14 = smov [#allocation5]  }
  0x14   : > { %p3648_p5 = pnand %p2575_p2, %p268_p3  ;;  %s297_s15 = sshll.u32 %s3539_s14, 4  ;;  %s298_s15 = int_to_ptr.vmem [resolvable:$true] %s297_s15 }
  0x15   : > { %s4413_s12 = scalar_select %p3644_p4, 1, 0 }
  0x16   : > { %s4414_s13 = scalar_select %p3648_p5, 1, 0 }
  0x17   : > { %p2967_p6 = pneg %p3648_p5  ;;  %s36_s17 = sadd.s32 1, %s3533_s9 }
  0x18   : > { %s4416_s1 = sld [smem:[#allocation25_spill]] }
  0x19   : > { %p3656_p7 = pnand %p2967_p6, %p4386_p1 }
  0x1b   : > { %s4415_s16 = scalar_select %p3656_p7, 1, 0 }
  0x1c   : > { %p3669_p9 = pneg %p3656_p7 }
  0x1e   : > { %s3241_s20 = scalar_lea.hbm %s4416_s1, 384 }
  0x1f   : > { %p3242_p8 = scmp.ne.s32.totalorder %s4416_s1, %s3241_s20  ;;  %p3248_p12 = scmp.lt.u32.totalorder %s3241_s20, %s4416_s1 }
  0x20   : > { %s4417_s23 = scalar_select %p3669_p9, 1, 0 }
  0x21   : > { %p3244_p10 = pnand %p3669_p9, %p3242_p8 }
  0x23   : > { %p3245_p11 = pneg %p3244_p10 }
  0x25   : > { %p3250_p13 = pnand %p3248_p12, %p3245_p11 }
  0x27   : > { %3253 = shalt.err (!%p3250_p13)
}
  0x28   : > { %s3254_s26 = scalar_lea.vmem %s298_s15, 384  ;;  %p3262_p6 = scmp.lt.s32.totalorder %s298_s15, %s298_s15 }
  0x29   : > { %p3255_p0 = scmp.ne.s32.totalorder %s298_s15, %s3254_s26  ;;  %p3263_p1 = scmp.lt.s32.totalorder %s3254_s26, %s3254_s26 }
  0x2b   : > { %p3257_p2 = pnand %p3255_p0, %p3669_p9  ;;  %p3264_p4 = por %p3263_p1, %p3262_p6 }
  0x2d   : > { %p3258_p3 = pneg %p3257_p2 }
  0x2f   : > { %p3265_p5 = pnand %p3264_p4, %p3258_p3 }
  0x31   : > { %3268 = shalt.err (!%p3265_p5)
}
  0x32   : > { %s4390_s27 = smov 64   ;;  %s4392_s14 = smov 4  }
  0x33   : > { %2973 = dma.hbm_to_vmem [thread:$0]  (!%p3656_p7), %s4416_s1, 384, %s298_s15, [#allocation6], %s4390_s27, %s4390_s27, %s4392_s14  }
  0x34   : > { %p37_p1 = scmp.ge.s32.totalorder %s36_s17, 2  ;;  %s114_s20 = sadd.s32 1, %s3525_s29 }
  0x35   : > { %p121_p4 = scmp.ne.s32.totalorder %s3525_s29, %s3521_s28  ;;  %p122_p5 = scmp.eq.s32.totalorder %s3537_s10, 0 }
  0x36   : > { %s4448_s17 = smov (%p37_p1, %s36_s17), 0  ;;  %p2993_p10 = scmp.lt.s32.totalorder %s3537_s10, 2 }
  0x37   : > { %4418 = sst [smem:[#allocation23_spill]] %s4448_s17  ;;  %p123_p8 = por %p122_p5, %p121_p4 }
  0x38   : > { %s111_s21 = ssub.s32 %s3533_s9, %s4448_s17  ;;  %s4395_s22 = sand.u32 1, %s3537_s10  }
  0x39   : > { %p112_p11 = scmp.eq.s32.totalorder %s111_s21, 0  ;;  %s326_s24 = sand.u32 1, %s3525_s29  }
  0x3a   : > { %s2941_s25 = smul.u32 3072, %s3533_s9  ;;  %s4420_s3 = sld [smem:[#allocation26_spill]] }
  0x3b   : > { %s3701_s26 = scalar_select %p112_p11, %s3525_s29, %s114_s20  }
  0x3c   : > { %s2940_s8 = smul.u32 192, %s326_s24  ;;  %p3708_p12 = pnand %p2993_p10, %p123_p8 }
  0x3d   : > { %4419 = sst [smem:[#allocation24_spill]] %s3701_s26  ;;  %s3714_s20 = sshll.u32 %s326_s24, 6 }
  0x3e   : > { %s4421_s27 = scalar_select %p3708_p12, 1, 0 }
  0x3f   : > { %s328_s21 = scalar_lea.vmem [#allocation8], %s2940_s8  ;;  %s3718_s1 = scalar_lea.sflag [#allocation9], %s4395_s22 }
  0x40   : > { %s3706_s19 = scalar_lea.hbm %s4420_s3, %s2941_s25  ;;  %s335_s14 = sshll.u32 %s328_s21, 4  ;;  %s3712_s14 = int_to_ptr.vmem [resolvable:$true] %s335_s14 }
  0x41   : > { %s3269_s25 = scalar_lea.hbm %s3706_s19, 3072  ;;  %p3724_p0 = pneg %p3708_p12 }
  0x42   : > { %p3270_p13 = scmp.ne.s32.totalorder %s3706_s19, %s3269_s25  ;;  %s3274_s21 = scalar_lea.hbm %s4420_s3, 6144 }
  0x43   : > { %p3275_p6 = scmp.lt.u32.totalorder %s3706_s19, %s4420_s3  ;;  %p3276_p1 = scmp.lt.u32.totalorder %s3274_s21, %s3269_s25 }
  0x44   : > { %p3272_p2 = pnand %p3724_p0, %p3270_p13  ;;  %p3278_p5 = scmp.lt.u32.totalorder %s3269_s25, %s3706_s19 }
  0x45   : > { %p3277_p4 = por %p3276_p1, %p3275_p6 }
  0x46   : > { %p3273_p3 = pneg %p3272_p2 }
  0x47   : > { %p3279_p8 = por %p3278_p5, %p3277_p4 }
  0x49   : > { %p3280_p10 = pnand %p3279_p8, %p3273_p3 }
  0x4b   : > { %3283 = shalt.err (!%p3280_p10)
}
  0x4c   : > { %s3284_s22 = scalar_lea.vmem %s3712_s14, 3072  ;;  %s3542_s8 = smov [#allocation8]  }
  0x4d   : > { %p3285_p11 = scmp.ne.s32.totalorder %s3712_s14, %s3284_s22  ;;  %s3289_s15 = sshll.u32 %s3542_s8, 4  ;;  %s3290_s15 = int_to_ptr.vmem [resolvable:$false] %s3289_s15 }
  0x4e   : > { %s3291_s17 = scalar_lea.vmem %s3290_s15, 6144  ;;  %p3292_p7 = scmp.lt.s32.totalorder %s3712_s14, %s3290_s15 }
  0x4f   : > { %p3287_p13 = pnand %p3285_p11, %p3724_p0  ;;  %p3293_p9 = scmp.lt.s32.totalorder %s3291_s17, %s3284_s22 }
  0x51   : > { %p3288_p2 = pneg %p3287_p13  ;;  %p3294_p6 = por %p3293_p9, %p3292_p7 }
  0x53   : > { %p3295_p1 = pnand %p3294_p6, %p3288_p2 }
  0x55   : > { %3298 = shalt.err (!%p3295_p1)
}
  0x56   : > { %s3543_s25 = smov 192   ;;  %s3544_s21 = smov 12  }
  0x57   : > { %2980 = dma.hbm_to_vmem [thread:$0]  (!%p3708_p12), %s3706_s19, 3072, %s3712_s14, %s3718_s1, %s3543_s25, %s3543_s25, %s3544_s21  }
  0x58   : > { %s3749_s24 = sshll.u32 %s3533_s9, 10  ;;  %s4423_s5 = sld [smem:[#allocation27_spill]] }
  0x59   : > { %s370_s17 = scalar_lea.vmem [#allocation11], %s3714_s20  ;;  %s4424_s26 = sand.u32 1, %s3537_s10  }
  0x5a   : > { %s377_s3 = sshll.u32 %s370_s17, 4  ;;  %s3762_s29 = scalar_lea.sflag [#allocation12], %s4424_s26  ;;  %s3758_s3 = int_to_ptr.vmem [resolvable:$true] %s377_s3 }
  0x5e   : > { %s3755_s15 = scalar_lea.hbm %s4423_s5, %s3749_s24  ;;  %s3304_s21 = scalar_lea.hbm %s4423_s5, 2048 }
  0x5f   : > { %s3299_s14 = scalar_lea.hbm %s3755_s15, 1024  ;;  %p3305_p4 = scmp.lt.u32.totalorder %s3755_s15, %s4423_s5 }
  0x60   : > { %p3300_p7 = scmp.ne.s32.totalorder %s3755_s15, %s3299_s14  ;;  %p3306_p5 = scmp.lt.u32.totalorder %s3304_s21, %s3299_s14 }
  0x61   : > { %p3308_p10 = scmp.lt.u32.totalorder %s3299_s14, %s3755_s15 }
  0x62   : > { %p3302_p9 = pnand %p3300_p7, %p3724_p0  ;;  %p3307_p8 = por %p3306_p5, %p3305_p4 }
  0x64   : > { %p3303_p3 = pneg %p3302_p9  ;;  %p3309_p11 = por %p3308_p10, %p3307_p8 }
  0x66   : > { %p3310_p13 = pnand %p3309_p11, %p3303_p3 }
  0x68   : > { %3313 = shalt.err (!%p3310_p13)
}
  0x69   : > { %s3314_s26 = scalar_lea.vmem %s3758_s3, 1024  ;;  %s3545_s17 = smov [#allocation11]  }
  0x6a   : > { %p3315_p2 = scmp.ne.s32.totalorder %s3758_s3, %s3314_s26  ;;  %s3319_s19 = sshll.u32 %s3545_s17, 4  ;;  %s3320_s19 = int_to_ptr.vmem [resolvable:$false] %s3319_s19 }
  0x6b   : > { %s3321_s25 = scalar_lea.vmem %s3320_s19, 2048  ;;  %p3322_p7 = scmp.lt.s32.totalorder %s3758_s3, %s3320_s19 }
  0x6c   : > { %p3317_p6 = pnand %p3315_p2, %p3724_p0  ;;  %p3323_p9 = scmp.lt.s32.totalorder %s3321_s25, %s3314_s26 }
  0x6e   : > { %p3318_p1 = pneg %p3317_p6  ;;  %p3324_p4 = por %p3323_p9, %p3322_p7 }
  0x70   : > { %p3325_p5 = pnand %p3324_p4, %p3318_p1 }
  0x72   : > { %3328 = shalt.err (!%p3325_p5)
}
  0x73   : > { %s4425_s14 = smov 4   ;;  %s4426_s21 = smov 64  }
  0x74   : > { %2986 = dma.hbm_to_vmem [thread:$0]  (!%p3708_p12), %s3755_s15, 1024, %s3758_s3, %s3762_s29, %s4426_s21, %s4426_s21, %s4425_s14  }
  0x75   : > { %s3546_s8 = smov [#allocation2]   ;;  %s3547_s17 = smov [#allocation7]  }
  0x76   : > { %s284_s22 = sshll.u32 %s3546_s8, 4  ;;  %s310_s5 = sshll.u32 %s3547_s17, 4  ;;  %s285_s22 = int_to_ptr.vmem [resolvable:$true] %s284_s22  ;;  %s3789_s5 = int_to_ptr.vmem [resolvable:$true] %s310_s5 }
  0x77   : > { %s3329_s25 = scalar_lea.hbm %s4377_s0, 256  ;;  %p4427_p8 = scmp.ne.s32.totalorder %s4417_s23, 0 }
  0x78   : > { %p3330_p3 = scmp.ne.s32.totalorder %s4377_s0, %s3329_s25  ;;  %p3336_p13 = scmp.lt.u32.totalorder %s3329_s25, %s4377_s0 }
  0x7a   : > { %p3332_p10 = pnand %p3330_p3, %p4427_p8 }
  0x7c   : > { %p3333_p11 = pneg %p3332_p10 }
  0x7e   : > { %p3338_p2 = pnand %p3336_p13, %p3333_p11 }
  0x80   : > { %3341 = shalt.err (!%p3338_p2)
}
  0x81   : > { %s3342_s15 = scalar_lea.vmem %s285_s22, 256  ;;  %p3350_p9 = scmp.lt.s32.totalorder %s285_s22, %s285_s22 }
  0x82   : > { %p3343_p6 = scmp.ne.s32.totalorder %s285_s22, %s3342_s15  ;;  %p3351_p4 = scmp.lt.s32.totalorder %s3342_s15, %s3342_s15 }
  0x84   : > { %p3345_p1 = pnand %p3343_p6, %p4427_p8  ;;  %p3352_p5 = por %p3351_p4, %p3350_p9 }
  0x86   : > { %p3346_p7 = pneg %p3345_p1 }
  0x88   : > { %p3353_p12 = pnand %p3352_p5, %p3346_p7 }
  0x8a   : > { %3356 = shalt.err (!%p3353_p12)
}
  0x8b   : > { %p4428_p3 = scmp.ne.s32.totalorder %s4415_s16, 0  ;;  %s3357_s17 = scalar_lea.hbm %s4379_s2, 256 }
  0x8c   : > { %p3358_p10 = scmp.ne.s32.totalorder %s4379_s2, %s3357_s17  ;;  %p3364_p13 = scmp.lt.u32.totalorder %s3357_s17, %s4379_s2 }
  0x8d   : > { %2970 = dma.hbm_to_vmem [thread:$0]  (!%p4428_p3), %s4377_s0, 256, %s285_s22, [#allocation3], %s4426_s21, %s4426_s21, %s4425_s14  }
  0x8e   : > { %p3360_p12 = pnand %p3358_p10, %p4427_p8 }
  0x90   : > { %p3361_p11 = pneg %p3360_p12 }
  0x92   : > { %p3366_p2 = pnand %p3364_p13, %p3361_p11 }
  0x94   : > { %3369 = shalt.err (!%p3366_p2)
}
  0x95   : > { %s3370_s22 = scalar_lea.vmem %s3789_s5, 256  ;;  %p3378_p9 = scmp.lt.s32.totalorder %s3789_s5, %s3789_s5 }
  0x96   : > { %p3371_p6 = scmp.ne.s32.totalorder %s3789_s5, %s3370_s22  ;;  %p3379_p4 = scmp.lt.s32.totalorder %s3370_s22, %s3370_s22 }
  0x98   : > { %p3373_p1 = pnand %p3371_p6, %p4427_p8  ;;  %p3380_p5 = por %p3379_p4, %p3378_p9 }
  0x9a   : > { %p3374_p7 = pneg %p3373_p1 }
  0x9c   : > { %p3381_p10 = pnand %p3380_p5, %p3374_p7 }
  0x9e   : > { %3384 = shalt.err (!%p3381_p10)
}
  0x9f   : > { %s3548_s15 = smov 128   ;;  %s3549_s7 = smov 8  }
  0xa0   : > { %2976 = dma.hbm_to_vmem [thread:$0]  (!%p4428_p3), %s4379_s2, 256, %s3789_s5, [#allocation6], %s3548_s15, %s3548_s15, %s3549_s7  }
  0xa1   : > { %s3839_s17 = scalar_lea.hbm %s4381_s4, %s3749_s24  ;;  %s349_s26 = scalar_lea.vmem [#allocation10], %s3714_s20 }
  0xa2   : > { %s356_s19 = sshll.u32 %s349_s26, 4  ;;  %s3848_s16 = scalar_lea.hbm %s4383_s6, %s3749_s24  ;;  %s3842_s19 = int_to_ptr.vmem [resolvable:$true] %s356_s19 }
  0xa3   : > { %s3385_s22 = scalar_lea.hbm %s3839_s17, 1024  ;;  %s3390_s7 = scalar_lea.hbm %s4381_s4, 2048 }
  0xa4   : > { %p3386_p8 = scmp.ne.s32.totalorder %s3839_s17, %s3385_s22  ;;  %p3391_p11 = scmp.lt.u32.totalorder %s3839_s17, %s4381_s4 }
  0xa5   : > { %p3392_p13 = scmp.lt.u32.totalorder %s3390_s7, %s3385_s22  ;;  %p3394_p6 = scmp.lt.u32.totalorder %s3385_s22, %s3839_s17 }
  0xa6   : > { %p3388_p3 = pnand %p3386_p8, %p3724_p0 }
  0xa7   : > { %p3393_p2 = por %p3392_p13, %p3391_p11 }
  0xa8   : > { %p3389_p12 = pneg %p3388_p3 }
  0xa9   : > { %p3395_p1 = por %p3394_p6, %p3393_p2 }
  0xab   : > { %p3396_p7 = pnand %p3395_p1, %p3389_p12 }
  0xad   : > { %3399 = shalt.err (!%p3396_p7)
}
  0xae   : > { %s3400_s24 = scalar_lea.vmem %s3842_s19, 1024  ;;  %s3550_s23 = smov [#allocation10]  }
  0xaf   : > { %p3401_p9 = scmp.ne.s32.totalorder %s3842_s19, %s3400_s24  ;;  %s3405_s8 = sshll.u32 %s3550_s23, 4  ;;  %s3406_s8 = int_to_ptr.vmem [resolvable:$false] %s3405_s8 }
  0xb0   : > { %s3407_s26 = scalar_lea.vmem %s3406_s8, 2048  ;;  %p3408_p10 = scmp.lt.s32.totalorder %s3842_s19, %s3406_s8 }
  0xb1   : > { %p3403_p4 = pnand %p3401_p9, %p3724_p0  ;;  %p3409_p8 = scmp.lt.s32.totalorder %s3407_s26, %s3400_s24 }
  0xb3   : > { %p3404_p5 = pneg %p3403_p4  ;;  %p3410_p3 = por %p3409_p8, %p3408_p10 }
  0xb5   : > { %p3411_p11 = pnand %p3410_p3, %p3404_p5 }
  0xb7   : > { %3414 = shalt.err (!%p3411_p11)
}
  0xb8   : > { %p4429_p12 = scmp.ne.s32.totalorder %s4421_s27, 0  ;;  %s391_s25 = scalar_lea.vmem [#allocation13], %s3714_s20 }
  0xb9   : > { %s398_s3 = sshll.u32 %s391_s25, 4  ;;  %s3415_s22 = scalar_lea.hbm %s3848_s16, 1024  ;;  %s3876_s3 = int_to_ptr.vmem [resolvable:$true] %s398_s3 }
  0xba   : > { %2983 = dma.hbm_to_vmem [thread:$0]  (!%p4429_p12), %s3839_s17, 1024, %s3842_s19, %s3718_s1, %s4426_s21, %s4426_s21, %s4425_s14  }
  0xbb   : > { %p3416_p13 = scmp.ne.s32.totalorder %s3848_s16, %s3415_s22  ;;  %s3420_s7 = scalar_lea.hbm %s4383_s6, 2048 }
  0xbc   : > { %p3421_p1 = scmp.lt.u32.totalorder %s3848_s16, %s4383_s6  ;;  %p3422_p7 = scmp.lt.u32.totalorder %s3420_s7, %s3415_s22 }
  0xbd   : > { %p3418_p2 = pnand %p3416_p13, %p3724_p0  ;;  %p3424_p4 = scmp.lt.u32.totalorder %s3415_s22, %s3848_s16 }
  0xbe   : > { %p3423_p9 = por %p3422_p7, %p3421_p1 }
  0xbf   : > { %p3419_p6 = pneg %p3418_p2 }
  0xc0   : > { %p3425_p5 = por %p3424_p4, %p3423_p9 }
  0xc2   : > { %p3426_p10 = pnand %p3425_p5, %p3419_p6 }
  0xc4   : > { %3429 = shalt.err (!%p3426_p10)
}
  0xc5   : > { %s3430_s1 = scalar_lea.vmem %s3876_s3, 1024  ;;  %s3551_s20 = smov [#allocation13]  }
  0xc6   : > { %p3431_p8 = scmp.ne.s32.totalorder %s3876_s3, %s3430_s1  ;;  %s3435_s17 = sshll.u32 %s3551_s20, 4  ;;  %s3436_s17 = int_to_ptr.vmem [resolvable:$false] %s3435_s17 }
  0xc7   : > { %s3437_s19 = scalar_lea.vmem %s3436_s17, 2048  ;;  %p3438_p13 = scmp.lt.s32.totalorder %s3876_s3, %s3436_s17 }
  0xc8   : > { %p3433_p3 = pnand %p3431_p8, %p3724_p0  ;;  %p3439_p2 = scmp.lt.s32.totalorder %s3437_s19, %s3430_s1 }
  0xca   : > { %p3434_p11 = pneg %p3433_p3  ;;  %p3440_p1 = por %p3439_p2, %p3438_p13 }
  0xcc   : > { %p3441_p7 = pnand %p3440_p1, %p3434_p11 }
  0xce   : > { %3444 = shalt.err (!%p3441_p7)
}
  0xcf   : > { %2989 = dma.hbm_to_vmem [thread:$0]  (!%p4429_p12), %s3848_s16, 1024, %s3876_s3, %s3762_s29, %s4426_s21, %s4426_s21, %s4425_s14  }
  0xd0   : > { %p4430_p0 = scmp.ne.s32.totalorder %s4414_s13, 0 }
  0xd1   : > { %p4431_p6 = scmp.eq.s32.totalorder (!%p4430_p0), %s3636_s11, 0 }
  0xd2   : > { %416 = sbr.rel (%p4430_p0) target bundleno = 2453 (0x995), region = 52 }
  0xd9   : > { %3496 = dma.done.wait (%p4431_p6), [#allocation3], 256   ;;  %p4432_p9 = pmov %p4431_p6 }
  0xda   : > { %p4433_p4 = pmov %p4431_p6 }
  0xdb   : > { %3498 = vsyncadd (%p4432_p9), [#allocation3], 4294967040 }
  0xdc   : > { %3500 = dma.done.wait (%p4433_p4), [#allocation6], 640   ;;  %p4434_p5 = pmov %p4433_p4 }
  0xdd   : > { %s430_s27 = sand.u32 1, %s3636_s11   ;;  %s432_s29 = sand.u32 1, %s3521_s28  }
  0xde   : > { %3502 = vsyncadd (%p4434_p5), [#allocation6], 4294966656  ;;  %s2942_s18 = smul.u32 192, %s432_s29  ;;  %s431_s13 = scalar_lea.sflag [#allocation9], %s430_s27 }
  0xdf   : > { %p4435_p12 = scmp.ne.s32.totalorder %s4413_s12, 0 }
  0xe0   : > { %s3915_s14 = scalar_lea.vmem [#allocation8], %s2942_s18 }
  0xe1   : > { %3504 = dma.done.wait (%p4435_p12), %s431_s13, 4096  }
  0xe2   : > { %3506 = vsyncadd (%p4435_p12), %s431_s13, 4294963200  ;;  %s2594_s21 = sshll.u32 %s432_s29, 6  ;;  %s449_s24 = scalar_lea.sflag [#allocation12], %s430_s27 }
  0xe3   : > { %s3921_s16 = scalar_lea.vmem [#allocation10], %s2594_s21  ;;  %s3923_s23 = scalar_lea.vmem [#allocation11], %s2594_s21 }
  0xe4   : > { %3508 = dma.done.wait (%p4435_p12), %s449_s24, 2048  }
  0xe5   : > { %3510 = vsyncadd (%p4435_p12), %s449_s24, 4294965248  ;;  %p508_p10 = scmp.lt.s32.totalorder %s3529_s30, 1  ;;  %s4436_s3 = sld [smem:[#allocation28_spill]] }
  0xe6   : > { %s3937_s5 = scalar_lea.vmem [#allocation13], %s2594_s21  ;;  %p2597_p8 = scmp.ne.s32.totalorder %s3529_s30, 0 }
  0xe7   : > { %s3931_s8 = scalar_select %p508_p10, %s3529_s30, 1 }
  0xe8   : > { %516 = sbr.rel (%p2597_p8) target bundleno = 463 (0x1cf), region = 84  ;;  %v3066_v0 = vld [vmem:[#allocation5] sm:$0xff] (!%p2597_p8)   ;;  %v3067_v1 = vld [vmem:[#allocation5 + $0x8] sm:$0xff] (!%p2597_p8)   ;;  %vm555_vm0 = vcmask (!%p2597_p8), 392192   ;;  %v3069_v2 = vld [vmem:[#allocation2] sm:$0xff] (!%p2597_p8)  }
  0xe9   : > { %2754 = vmatprep.subr.bf16.mxu0 (!%p2597_p8), %v3066_v0  ;;  %v3068_v3 = vld [vmem:[#allocation5 + $0x10] sm:$0xff] (!%p2597_p8)   ;;  %2760 = vmatprep.mubr.msk.bf16.mxu0 (!%p2597_p8), %vm555_vm0, %v3069_v2  ;;  %v3070_v4 = vld [vmem:[#allocation2 + $0x8] sm:$0xff] (!%p2597_p8)   ;;  %v612_v7 = vld [vmem:[#allocation7 + $0x8] sm:$0xff] (!%p2597_p8) }
  0xea   : > { %2755 = vmatpush3.bf16.msra.mxu0 (!%p2597_p8), %v3066_v0  ;;  %v611_v5 = vld [vmem:[#allocation7] sm:$0xff] (!%p2597_p8) }
  0xeb   : > { %s510_s22 = scalar_lea.vmem %s4436_s3, %s3931_s8  ;;  %2756 = vmatprep.subr.bf16.mxu0 (!%p2597_p8), %v3067_v1 }
  0xee   : > { %2757 = vmatpush3.bf16.msra.mxu0 (!%p2597_p8), %v3067_v1 }
  0xef   : > { %2758 = vmatprep.subr.bf16.mxu0 %v3068_v3 }
  0xf2   : > { %2759 = vmatpush3.bf16.msra.mxu0 %v3068_v3 }
  0xf5   : > { %2761 = vmatmul.mubr.msk.bf16.vlgmr.msra.gmra.mrb[0].mxu0 %vm555_vm0, %v3070_v4 }
 0x1c8   : > { %v2762_v6 = vpop.f32.mrb[0].mxu0 }
 0x1c9   : > { %v615_v8 = vadd.f32 %v2762_v6, %v611_v5  ;;  %v596_v9 = vpop.f32.mrb[1].mxu0 }
 0x1ca   : > { %v613_v10 = vadd.f32 %v611_v5, %v596_v9  ;;  %v2763_v11 = vpop.f32.mrb[2].mxu0 }
 0x1cb   : > { %619 = vst [vmem:[#allocation14 + $0x10] sm:$0xff] %v615_v8  ;;  %v616_v12 = vadd.f32 %v2763_v11, %v612_v7  ;;  %v599_v13 = vpop.f32.mrb[3].mxu0 }
 0x1cc   : > { %617 = vst [vmem:[#allocation14] sm:$0xff] %v613_v10  ;;  %v614_v14 = vadd.f32 %v612_v7, %v599_v13 }
 0x1cd   : > { %620 = vst [vmem:[#allocation14 + $0x18] sm:$0xff] %v616_v12 }
 0x1ce   : > { %618 = vst [vmem:[#allocation14 + $0x8] sm:$0xff] %v614_v14 }
 0x1cf PF: > { %v3101_v15 = vld [vmem:[%s3915_s14 + $0x4] ss:$12 sps:$4 sm:$0xff]   ;;  %v3103_v16 = vld [vmem:[%s3915_s14] ss:$12 sps:$4 sm:$0xff]   ;;  %v3552_v17 = vmov 0   ;;  %v3553_v38 = vmov 0.0  }
 0x1d0   : > { %819 = vmatprep.mubr.bf16.mxu0 %v3552_v17  ;;  %787 = vmatprep.subr.bf16.mxu0 %v3101_v15  ;;  %v3104_v18 = vld [vmem:[%s3915_s14 + $0x1c] ss:$12 sps:$4 sm:$0xff]   ;;  %v3106_v19 = vld [vmem:[%s3915_s14 + $0x18] ss:$12 sps:$4 sm:$0xff]   ;;  %v3107_v20 = vld [vmem:[%s3915_s14 + $0x34] ss:$12 sps:$4 sm:$0xff]  }
 0x1d1   : > { %788 = vmatpush1.bf16.msra.mxu0 %v3103_v16  ;;  %v3109_v21 = vld [vmem:[%s3915_s14 + $0x30] ss:$12 sps:$4 sm:$0xff]   ;;  %v3110_v22 = vld [vmem:[%s3915_s14 + $0x4c] ss:$12 sps:$4 sm:$0xff]   ;;  %v3112_v24 = vld [vmem:[%s3915_s14 + $0x48] ss:$12 sps:$4 sm:$0xff]  }
 0x1d2   : > { %789 = vmatprep.subr.bf16.mxu0 %v3104_v18  ;;  %v3113_v25 = vld [vmem:[%s3915_s14 + $0x64] ss:$12 sps:$4 sm:$0xff]   ;;  %v3115_v28 = vld [vmem:[%s3915_s14 + $0x60] ss:$12 sps:$4 sm:$0xff]   ;;  %v3116_v29 = vld [vmem:[%s3915_s14 + $0x7c] ss:$12 sps:$4 sm:$0xff]  }
 0x1d3   : > { %v621_v23 = vld [vmem:[#allocation14] sm:$0xff]  ;;  %v3121_v32 = vld [vmem:[%s3915_s14 + $0x90] ss:$12 sps:$4 sm:$0xff]   ;;  %v3122_v33 = vld [vmem:[%s3915_s14 + $0xac] ss:$12 sps:$4 sm:$0xff]   ;;  %vm3554_vm1 = vmmov 0  }
 0x1d4   : > { %v3118_v30 = vld [vmem:[%s3915_s14 + $0x78] ss:$12 sps:$4 sm:$0xff]   ;;  %v3119_v31 = vld [vmem:[%s3915_s14 + $0x94] ss:$12 sps:$4 sm:$0xff]   ;;  %v3128_v42 = vld [vmem:[%s3915_s14 + $0x50] ss:$12 sps:$4 sm:$0xff]  }
 0x1d5   : > { %790 = vmatpush1.bf16.msra.mxu0 %v3106_v19  ;;  %v622_v26 = vld [vmem:[#allocation14 + $0x8] sm:$0xff]  ;;  %v623_v35 = vld [vmem:[#allocation14 + $0x10] sm:$0xff]  ;;  %v624_v36 = vld [vmem:[#allocation14 + $0x18] sm:$0xff]  ;;  %vm943_vm2 = vcmask 261120   ;;  %s3555_s30 = smov 96   ;;  %s3556_s12 = smov 64  }
 0x1d6   : > { %791 = vmatprep.subr.bf16.mxu0 %v3107_v20  ;;  %v625_v27 = vpack.c.bf16 %v622_v26, %v621_v23  ;;  %v3124_v34 = vld [vmem:[%s3915_s14 + $0xa8] ss:$12 sps:$4 sm:$0xff]   ;;  %v626_v37 = vpack.c.bf16 %v624_v36, %v623_v35  ;;  %v3126_v40 = vld [vmem:[%s3915_s14 + $0x20] ss:$12 sps:$4 sm:$0xff]   ;;  %v3127_v41 = vld [vmem:[%s3915_s14 + $0x38] ss:$12 sps:$4 sm:$0xff]  }
 0x1d7   : > { %v3125_v39 = vld [vmem:[%s3915_s14 + $0x8] ss:$12 sps:$4 sm:$0xff]   ;;  %v3130_v44 = vld [vmem:[%s3915_s14 + $0x80] ss:$12 sps:$4 sm:$0xff]   ;;  %v3131_v45 = vld [vmem:[%s3915_s14 + $0x98] ss:$12 sps:$4 sm:$0xff]  }
 0x1d8   : > { %2780 = vmatprep.mubr.bf16.mxu1 %v625_v27  ;;  %2764 = vmatprep.subr.bf16.mxu1 %v3125_v39  ;;  %v3129_v43 = vld [vmem:[%s3915_s14 + $0x68] ss:$12 sps:$4 sm:$0xff]   ;;  %v3132_v46 = vld [vmem:[%s3915_s14 + $0xb0] ss:$12 sps:$4 sm:$0xff]   ;;  %s3557_s15 = smov 32   ;;  %vm1320_vm3 = vcmask 130048  }
 0x1d9   : > { %792 = vmatpush1.bf16.msra.mxu0 %v3109_v21  ;;  %2765 = vmatpush3.bf16.msra.mxu1 %v3125_v39  ;;  %vm1909_vm4 = vcmask 523264   ;;  %vm1914_vm5 = vcmask 785408   ;;  %s3559_s1 = smov [#allocation14]   ;;  %p2997_p3 = scmp.eq.s32.totalorder %s3636_s11, 1 }
 0x1da   : > { %793 = vmatprep.subr.bf16.mxu0 %v3110_v22  ;;  %2766 = vmatprep.subr.bf16.mxu1 %v3126_v40  ;;  %s2405_s20 = sshll.u32 %s3559_s1, 4  ;;  %s2406_s20 = int_to_ptr.vmem [resolvable:$true] %s2405_s20 }
 0x1db   : > { %s3445_s17 = scalar_lea.vmem %s2406_s20, 512  ;;  %p3452_p1 = scmp.lt.s32.totalorder %s2406_s20, %s2406_s20 }
 0x1dc   : > { %p3446_p11 = scmp.ne.s32.totalorder %s2406_s20, %s3445_s17  ;;  %p3453_p7 = scmp.lt.s32.totalorder %s3445_s17, %s3445_s17 }
 0x1dd   : > { %794 = vmatpush1.bf16.msra.mxu0 %v3112_v24  ;;  %2767 = vmatpush3.bf16.msra.mxu1 %v3126_v40 }
 0x1de   : > { %795 = vmatprep.subr.bf16.mxu0 %v3113_v25  ;;  %2768 = vmatprep.subr.bf16.mxu1 %v3127_v41  ;;  %p3447_p13 = pnand %p3446_p11, %p2997_p3  ;;  %p3454_p0 = por %p3453_p7, %p3452_p1 }
 0x1e0   : > { %p3448_p2 = pneg %p3447_p13 }
 0x1e1   : > { %796 = vmatpush1.bf16.msra.mxu0 %v3115_v28  ;;  %2769 = vmatpush3.bf16.msra.mxu1 %v3127_v41 }
 0x1e2   : > { %797 = vmatprep.subr.bf16.mxu0 %v3116_v29  ;;  %2770 = vmatprep.subr.bf16.mxu1 %v3128_v42  ;;  %p3455_p6 = pnand %p3454_p0, %p3448_p2 }
 0x1e5   : > { %798 = vmatpush1.bf16.msra.mxu0 %v3118_v30  ;;  %2771 = vmatpush3.bf16.msra.mxu1 %v3128_v42 }
 0x1e6   : > { %799 = vmatprep.subr.bf16.mxu0 %v3119_v31  ;;  %2772 = vmatprep.subr.bf16.mxu1 %v3129_v43 }
 0x1e9   : > { %800 = vmatpush1.bf16.msra.mxu0 %v3121_v32  ;;  %2773 = vmatpush3.bf16.msra.mxu1 %v3129_v43 }
 0x1ea   : > { %801 = vmatprep.subr.bf16.mxu0 %v3122_v33  ;;  %2774 = vmatprep.subr.bf16.mxu1 %v3130_v44 }
 0x1ed   : > { %802 = vmatpush1.bf16.msra.mxu0 %v3124_v34  ;;  %2775 = vmatpush3.bf16.msra.mxu1 %v3130_v44 }
 0x1ee   : > { %2784 = vmatprep.subr.bf16.mxu0 %v3553_v38  ;;  %2776 = vmatprep.subr.bf16.mxu1 %v3131_v45 }
 0x1f0   : > { %820 = vmatmul.mubr.bf16.vlgmr.msra.gmra.mrb[0].mxu0 %v625_v27 }
 0x1f1   : > { %829 = vmatprep.mubr.bf16.mxu0 %v3552_v17  ;;  %2777 = vmatpush3.bf16.msra.mxu1 %v3131_v45 }
 0x1f2   : > { %2778 = vmatprep.subr.bf16.mxu1 %v3132_v46 }
 0x1f5   : > { %2779 = vmatpush3.bf16.msra.mxu1 %v3132_v46 }
 0x1f6   : > { %2796 = vmatprep.subr.bf16.mxu1 %v3553_v38 }
 0x1f8   : > { %830 = vmatmul.mubr.bf16.gmra.mrb[4].mxu0 %v626_v37  ;;  %2781 = vmatmul.mubr.bf16.vlgmr.msra.gmra.mrb[0].mxu1 %v626_v37 }
 0x1f9   : > { %2786 = vmatprep.mubr.msk.bf16.mxu0 %vm3554_vm1, %v3553_v38  ;;  %2798 = vmatprep.mubr.msk.bf16.mxu1 %vm3554_vm1, %v3553_v38 }
 0x2c3   : > { %v821_v47 = vpop.f32.mrb[0].mxu0 }
 0x2c4   : > { %v823_v48 = vpop.f32.mrb[1].mxu0 }
 0x2c5   : > { %v825_v49 = vpop.f32.mrb[2].mxu0 }
 0x2c6   : > { %v889_v50 = vpack.c.bf16 %v825_v49, %v821_v47  ;;  %v827_v51 = vpop.f32.mrb[3].mxu0 }
 0x2c7   : > { %v890_v52 = vpack.c.bf16 %v827_v51, %v823_v48 }
 0x2c8   : > { %897 = vrot.lane.b32.xlu1 %v889_v50, %s3555_s30 }
 0x2c9   : > { %911 = vrot.lane.b32.xlu0 %v890_v52, %s3555_s30  ;;  %v948_v53 = vsel %vm943_vm2, %v890_v52, 0 }
 0x2ca   : > { %2785 = vmatpush3.bf16.xpose.msra.mxu0 %v948_v53 }
 0x2cb   : > { %v831_v54 = vpop.f32.mrb[4].mxu0  ;;  %2790 = vmatprep.subr.bf16.mxu0 %v3553_v38  ;;  %v2782_v14 = vpop.f32.mrb[0].mxu1 }
 0x2cc   : > { %915 = vrot.lane.b32.xlu1 %v890_v52, %s3556_s12  ;;  %v833_v55 = vpop.f32.mrb[5].mxu0  ;;  %v874_v15 = vpop.f32.mrb[1].mxu1 }
 0x2cd   : > { %v835_v56 = vpop.f32.mrb[6].mxu0  ;;  %v2783_v16 = vpop.f32.mrb[2].mxu1 }
 0x2ce   : > { %v892_v57 = vpack.c.bf16 %v835_v56, %v831_v54  ;;  %v837_v58 = vpop.f32.mrb[7].mxu0  ;;  %v4019_v17 = vpack.c.bf16 %v2783_v16, %v2782_v14  ;;  %v877_v18 = vpop.f32.mrb[3].mxu1 }
 0x2cf   : > { %v893_v59 = vpack.c.bf16 %v837_v58, %v833_v55  ;;  %v4021_v19 = vpack.c.bf16 %v877_v18, %v874_v15 }
 0x2d1   : > { %2787 = vmatmul.mubr.msk.bf16.vlgmr.msra.gmra.mrb[8].mxu0 %vm943_vm2, %v889_v50  ;;  %917 = vrot.lane.b32.xlu1 %v893_v59, %s3556_s12  ;;  %v995_v60 = vsel %vm943_vm2, %v893_v59, 0 }
 0x2d2   : > { %913 = vrot.lane.b32.xlu0 %v893_v59, %s3555_s30  ;;  %2791 = vmatpush3.bf16.xpose.msra.mxu0 %v995_v60 }
 0x2d3   : > { %2792 = vmatprep.mubr.msk.bf16.mxu0 %vm3554_vm1, %v3553_v38  ;;  %2802 = vmatprep.subr.bf16.mxu0 %v3553_v38 }
 0x2d5   : > { %919 = vrot.lane.b32.xlu1 %v890_v52, %s3557_s15 }
 0x2d6   : > { %899 = vrot.lane.b32.xlu0 %v892_v57, %s3555_s30 }
 0x2d9   : > { %921 = vrot.lane.b32.xlu1 %v893_v59, %s3557_s15  ;;  %2793 = vmatmul.mubr.msk.bf16.vlgmr.msra.gmra.mrb[12].mxu0 %vm943_vm2, %v892_v57 }
 0x2da   : > { %901 = vrot.lane.b32.xlu0 %v889_v50, %s3556_s12  ;;  %2804 = vmatprep.mubr.msk.bf16.mxu0 %vm3554_vm1, %v3553_v38 }
 0x2dd   : > { %907 = vrot.lane.b32.xlu1 %v892_v57, %s3557_s15 }
 0x2de   : > { %903 = vrot.lane.b32.xlu0 %v892_v57, %s3556_s12 }
 0x2e2   : > { %905 = vrot.lane.b32.xlu0 %v889_v50, %s3557_s15 }
 0x33a   : > { %v898_v61 = vpop.permute.xlu1 %897 }
 0x33b   : > { %v912_v62 = vpop.permute.xlu0 %911 }
 0x33c   : > { %v1042_v63 = vsel %vm943_vm2, %v912_v62, 0 }
 0x33d   : > { %2797 = vmatpush3.bf16.xpose.msra.mxu1 %v1042_v63 }
 0x33e   : > { %v916_v0 = vpop.permute.xlu1 %915  ;;  %2808 = vmatprep.subr.bf16.mxu1 %v3553_v38 }
 0x33f   : > { %v1136_v1 = vsel %vm943_vm2, %v916_v0, 0 }
 0x343   : > { %v918_v2 = vpop.permute.xlu1 %917 }
 0x344   : > { %v914_v3 = vpop.permute.xlu0 %913  ;;  %2799 = vmatmul.mubr.msk.bf16.vlgmr.msra.gmra.mrb[4].mxu1 %vm943_vm2, %v898_v61  ;;  %v1183_v8 = vsel %vm943_vm2, %v918_v2, 0 }
 0x345   : > { %v1089_v4 = vsel %vm943_vm2, %v914_v3, 0  ;;  %2809 = vmatpush3.bf16.xpose.msra.mxu1 %v1136_v1  ;;  %2810 = vmatprep.mubr.msk.bf16.mxu1 %vm3554_vm1, %v3553_v38 }
 0x346   : > { %2803 = vmatpush3.bf16.xpose.msra.mxu0 %v1089_v4  ;;  %2820 = vmatprep.subr.bf16.mxu1 %v3553_v38 }
 0x347   : > { %2814 = vmatprep.subr.bf16.mxu0 %v3553_v38  ;;  %v920_v6 = vpop.permute.xlu1 %919 }
 0x348   : > { %v900_v5 = vpop.permute.xlu0 %899  ;;  %v1230_v9 = vsel %vm943_vm2, %v920_v6, 0 }
 0x34b   : > { %v922_v11 = vpop.permute.xlu1 %921 }
 0x34c   : > { %v902_v7 = vpop.permute.xlu0 %901  ;;  %v1277_v13 = vsel %vm943_vm2, %v922_v11, 0 }
 0x34d   : > { %2805 = vmatmul.mubr.msk.bf16.vlgmr.msra.gmra.mrb[16].mxu0 %vm943_vm2, %v900_v5  ;;  %2811 = vmatmul.mubr.msk.bf16.vlgmr.msra.gmra.mrb[8].mxu1 %vm943_vm2, %v902_v7 }
 0x34e   : > { %2815 = vmatpush3.bf16.xpose.msra.mxu0 %v1183_v8  ;;  %2821 = vmatpush3.bf16.xpose.msra.mxu1 %v1230_v9 }
 0x34f   : > { %2822 = vmatprep.mubr.msk.bf16.mxu1 %vm3554_vm1, %v3553_v38  ;;  %2816 = vmatprep.mubr.msk.bf16.mxu0 %vm3554_vm1, %v3553_v38  ;;  %v908_v20 = vpop.permute.xlu1 %907 }
 0x350   : > { %v904_v10 = vpop.permute.xlu0 %903  ;;  %2826 = vmatprep.subr.bf16.mxu0 %v3553_v38  ;;  %2832 = vmatprep.subr.bf16.mxu1 %v3553_v38 }
 0x354   : > { %v906_v12 = vpop.permute.xlu0 %905 }
 0x355   : > { %2817 = vmatmul.mubr.msk.bf16.vlgmr.msra.gmra.mrb[20].mxu0 %vm943_vm2, %v904_v10  ;;  %2823 = vmatmul.mubr.msk.bf16.vlgmr.msra.gmra.mrb[12].mxu1 %vm943_vm2, %v906_v12 }
 0x356   : > { %2827 = vmatpush3.bf16.xpose.msra.mxu0 %v1277_v13  ;;  %2828 = vmatprep.mubr.msk.bf16.mxu0 %vm3554_vm1, %v3553_v38 }
 0x357   : > { %2838 = vmatprep.subr.bf16.mxu0 %v3553_v38  ;;  %2834 = vmatprep.mubr.msk.bf16.mxu1 %vm3554_vm1, %v3553_v38 }
 0x358   : > { %2833 = vmatpush3.bf16.msra.mxu1 %v4021_v19 }
 0x359   : > { %2844 = vmatprep.subr.bf16.mxu1 %v3553_v38 }
 0x35d   : > { %2829 = vmatmul.mubr.msk.bf16.vlgmr.msra.gmra.mrb[24].mxu0 %vm943_vm2, %v908_v20 }
 0x35e   : > { %2839 = vmatpush3.bf16.msra.mxu0 %v4019_v17  ;;  %2840 = vmatprep.mubr.msk.bf16.mxu0 %vm3554_vm1, %v3553_v38 }
 0x35f   : > { %2850 = vmatprep.subr.bf16.mxu0 %v3553_v38 }
 0x3a4   : > { %v4030_v21 = vpop.f32.mrb[8].mxu0 }
 0x3a5   : > { %v2788_v22 = vpop.f32.mrb[9].mxu0  ;;  %v1321_v23 = vsel %vm1320_vm3, %v4030_v21, -inf }
 0x3a6   : > { %v4034_v24 = vpop.f32.mrb[10].mxu0  ;;  %1322 = vmax.xlane.f32.xlu0 %v1321_v23 }
 0x3a7   : > { %v2789_v25 = vpop.f32.mrb[11].mxu0  ;;  %v1324_v26 = vsel %vm1320_vm3, %v4034_v24, -inf }
 0x3a8   : > { %1325 = vmax.xlane.f32.xlu1 %v1324_v26 }
 0x3ac   : > { %v4038_v27 = vpop.f32.mrb[12].mxu0 }
 0x3ad   : > { %v2794_v28 = vpop.f32.mrb[13].mxu0  ;;  %v1327_v29 = vsel %vm1320_vm3, %v4038_v27, -inf }
 0x3ae   : > { %1328 = vmax.xlane.f32.xlu0 %v1327_v29  ;;  %v4042_v30 = vpop.f32.mrb[14].mxu0 }
 0x3af   : > { %v2795_v31 = vpop.f32.mrb[15].mxu0  ;;  %v1330_v32 = vsel %vm1320_vm3, %v4042_v30, -inf }
 0x3b2   : > { %1331 = vmax.xlane.f32.xlu0 %v1330_v32 }
 0x417   : > { %v4046_v33 = vpop.f32.mrb[4].mxu1 }
 0x418   : > { %v2800_v34 = vpop.f32.mrb[5].mxu1  ;;  %v1333_v35 = vsel %vm1320_vm3, %v4046_v33, -inf }
 0x419   : > { %v4050_v36 = vpop.f32.mrb[6].mxu1  ;;  %1334 = vmax.xlane.f32.xlu1 %v1333_v35 }
 0x41a   : > { %v2801_v37 = vpop.f32.mrb[7].mxu1  ;;  %v1336_v39 = vsel %vm1320_vm3, %v4050_v36, -inf }
 0x41b   : > { %1337 = vmax.xlane.f32.xlu0 %v1336_v39 }
 0x420   : > { %v4054_v40 = vpop.f32.mrb[16].mxu0  ;;  %v4056_v41 = vpop.f32.mrb[8].mxu1 }
 0x421   : > { %v2806_v42 = vpop.f32.mrb[17].mxu0  ;;  %v2812_v43 = vpop.f32.mrb[9].mxu1  ;;  %v1339_v44 = vsel %vm1320_vm3, %v4054_v40, -inf  ;;  %v1345_v50 = vsel %vm1320_vm3, %v4056_v41, -inf }
 0x422   : > { %v4060_v45 = vpop.f32.mrb[10].mxu1  ;;  %1340 = vmax.xlane.f32.xlu1 %v1339_v44  ;;  %v4062_v46 = vpop.f32.mrb[18].mxu0 }
 0x423   : > { %v2807_v47 = vpop.f32.mrb[19].mxu0  ;;  %v2813_v48 = vpop.f32.mrb[11].mxu1  ;;  %v1342_v49 = vsel %vm1320_vm3, %v4062_v46, -inf  ;;  %v1348_v51 = vsel %vm1320_vm3, %v4060_v45, -inf }
 0x424   : > { %1343 = vmax.xlane.f32.xlu0 %v1342_v49 }
 0x426   : > { %1346 = vmax.xlane.f32.xlu1 %v1345_v50 }
 0x428   : > { %v4070_v52 = vpop.f32.mrb[12].mxu1  ;;  %1349 = vmax.xlane.f32.xlu0 %v1348_v51  ;;  %v4072_v53 = vpop.f32.mrb[20].mxu0 }
 0x429   : > { %v2818_v54 = vpop.f32.mrb[21].mxu0  ;;  %v2824_v55 = vpop.f32.mrb[13].mxu1  ;;  %v1351_v56 = vsel %vm1320_vm3, %v4072_v53, -inf  ;;  %v1357_v62 = vsel %vm1320_vm3, %v4070_v52, -inf }
 0x42a   : > { %v4076_v57 = vpop.f32.mrb[14].mxu1  ;;  %1352 = vmax.xlane.f32.xlu1 %v1351_v56  ;;  %v4078_v58 = vpop.f32.mrb[22].mxu0 }
 0x42b   : > { %v2819_v59 = vpop.f32.mrb[23].mxu0  ;;  %v2825_v60 = vpop.f32.mrb[15].mxu1  ;;  %v1354_v61 = vsel %vm1320_vm3, %v4078_v58, -inf  ;;  %v1360_v63 = vsel %vm1320_vm3, %v4076_v57, -inf }
 0x42c   : > { %1355 = vmax.xlane.f32.xlu0 %v1354_v61 }
 0x42e   : > { %1358 = vmax.xlane.f32.xlu1 %v1357_v62 }
 0x430   : > { %1361 = vmax.xlane.f32.xlu0 %v1360_v63  ;;  %v4086_v0 = vpop.f32.mrb[24].mxu0 }
 0x431   : > { %v2830_v1 = vpop.f32.mrb[25].mxu0  ;;  %v1363_v2 = vsel %vm1320_vm3, %v4086_v0, -inf }
 0x432   : > { %1364 = vmax.xlane.f32.xlu1 %v1363_v2  ;;  %v4090_v3 = vpop.f32.mrb[26].mxu0 }
 0x433   : > { %v2831_v4 = vpop.f32.mrb[27].mxu0  ;;  %v1366_v5 = vsel %vm1320_vm3, %v4090_v3, -inf  ;;  %v1323_v6 = vpop.xlane.xlu0 %1322 }
 0x434   : > { %1367 = vmax.xlane.f32.xlu0 %v1366_v5  ;;  %v1369_v13 = vsub.f32 %v4030_v21, %v1323_v6 }
 0x435   : > { %v1326_v8 = vpop.xlane.xlu1 %1325 }
 0x436   : > { %v1370_v9 = vsub.f32 %v4034_v24, %v1326_v8  ;;  %v1385_v15 = vmul.f32 1.442695, %v1369_v13 }
 0x438   : > { %v1387_v11 = vmul.f32 1.442695, %v1370_v9 }
 0x43a   : > { %3157 = vpow2.f32 %v1387_v11 }
 0x43b   : > { %v1329_v7 = vpop.xlane.xlu0 %1328 }
 0x43c   : > { %v1371_v16 = vsub.f32 %v4038_v27, %v1329_v7 }
 0x43e   : > { %v1389_v18 = vmul.f32 1.442695, %v1371_v16 }
 0x43f   : > { %v1332_v10 = vpop.xlane.xlu0 %1331 }
 0x440   : > { %v1372_v12 = vsub.f32 %v4042_v30, %v1332_v10 }
 0x442   : > { %v1391_v14 = vmul.f32 1.442695, %v1372_v12 }
 0x443   : > { %925 = vrot.lane.b32.xlu1 %v4021_v19, %s3555_s30 }
 0x444   : > { %3159 = vpow2.f32 %v1391_v14  ;;  %v4106_v20 = vpop.eup %3157 }
 0x445   : > { %3161 = vpow2.f32 %v1385_v15  ;;  %v1420_v22 = vsel %vm1320_vm3, %v4106_v20, 0.0 }
 0x446   : > { %3163 = vpow2.f32 %v1389_v18 }
 0x447   : > { %931 = vrot.lane.b32.xlu1 %v4021_v19, %s3556_s12 }
 0x44a   : > { %927 = vrot.lane.b32.xlu0 %v4019_v17, %s3555_s30 }
 0x44b   : > { %933 = vrot.lane.b32.xlu1 %v4019_v17, %s3556_s12 }
 0x44e   : > { %v4110_v23 = vpop.eup %3159 }
 0x44f   : > { %v4112_v24 = vpop.eup %3161  ;;  %v1426_v21 = vsel %vm1320_vm3, %v4110_v23, 0.0 }
 0x450   : > { %v1417_v25 = vsel %vm1320_vm3, %v4112_v24, 0.0  ;;  %v4118_v26 = vpop.eup %3163 }
 0x451   : > { %v1423_v27 = vsel %vm1320_vm3, %v4118_v26, 0.0 }
 0x469   : > { %1421 = vadd.xlane.f32.xlu0 %v1420_v22 }
 0x46d   : > { %1427 = vadd.xlane.f32.xlu0 %v1426_v21 }
 0x46f   : > { %1418 = vadd.xlane.f32.xlu1 %v1417_v25 }
 0x473   : > { %1424 = vadd.xlane.f32.xlu1 %v1423_v27 }
 0x4a6   : > { %v1335_v28 = vpop.xlane.xlu1 %1334 }
 0x4a7   : > { %v1373_v29 = vsub.f32 %v4046_v33, %v1335_v28 }
 0x4a8   : > { %v1338_v30 = vpop.xlane.xlu0 %1337 }
 0x4a9   : > { %v1393_v31 = vmul.f32 1.442695, %v1373_v29  ;;  %v1374_v32 = vsub.f32 %v4050_v36, %v1338_v30 }
 0x4ab   : > { %3165 = vpow2.f32 %v1393_v31  ;;  %v1395_v34 = vmul.f32 1.442695, %v1374_v32 }
 0x4ad   : > { %3167 = vpow2.f32 %v1395_v34 }
 0x4af   : > { %v1341_v35 = vpop.xlane.xlu1 %1340 }
 0x4b0   : > { %v1375_v37 = vsub.f32 %v4054_v40, %v1341_v35 }
 0x4b1   : > { %v1344_v39 = vpop.xlane.xlu0 %1343 }
 0x4b2   : > { %v1397_v42 = vmul.f32 1.442695, %v1375_v37  ;;  %v1376_v43 = vsub.f32 %v4062_v46, %v1344_v39 }
 0x4b3   : > { %v1347_v44 = vpop.xlane.xlu1 %1346 }
 0x4b4   : > { %3169 = vpow2.f32 %v1397_v42  ;;  %v1399_v47 = vmul.f32 1.442695, %v1376_v43  ;;  %v1377_v48 = vsub.f32 %v4056_v41, %v1347_v44 }
 0x4b5   : > { %v4127_v33 = vpop.eup %3165  ;;  %v1350_v49 = vpop.xlane.xlu0 %1349 }
 0x4b6   : > { %3171 = vpow2.f32 %v1399_v47  ;;  %v1401_v36 = vmul.f32 1.442695, %v1377_v48  ;;  %v1378_v50 = vsub.f32 %v4060_v45, %v1350_v49  ;;  %v1429_v51 = vsel %vm1320_vm3, %v4127_v33, 0.0 }
 0x4b7   : > { %v4132_v40 = vpop.eup %3167  ;;  %v1353_v54 = vpop.xlane.xlu1 %1352  ;;  %1430 = vadd.xlane.f32.xlu1 %v1429_v51 }
 0x4b8   : > { %3173 = vpow2.f32 %v1401_v36  ;;  %v1403_v46 = vmul.f32 1.442695, %v1378_v50  ;;  %v1379_v55 = vsub.f32 %v4072_v53, %v1353_v54  ;;  %v1432_v41 = vsel %vm1320_vm3, %v4132_v40, 0.0 }
 0x4b9   : > { %v1356_v56 = vpop.xlane.xlu0 %1355  ;;  %1433 = vadd.xlane.f32.xlu0 %v1432_v41 }
 0x4ba   : > { %3175 = vpow2.f32 %v1403_v46  ;;  %v1405_v59 = vmul.f32 1.442695, %v1379_v55  ;;  %v1380_v45 = vsub.f32 %v4078_v58, %v1356_v56 }
 0x4bb   : > { %v1359_v60 = vpop.xlane.xlu1 %1358 }
 0x4bc   : > { %3177 = vpow2.f32 %v1405_v59  ;;  %v1407_v61 = vmul.f32 1.442695, %v1380_v45  ;;  %v1381_v62 = vsub.f32 %v4070_v52, %v1359_v60 }
 0x4bd   : > { %v1362_v63 = vpop.xlane.xlu0 %1361 }
 0x4be   : > { %v4139_v1 = vpop.eup %3169  ;;  %3179 = vpow2.f32 %v1407_v61  ;;  %v1409_v2 = vmul.f32 1.442695, %v1381_v62  ;;  %v1382_v53 = vsub.f32 %v4076_v57, %v1362_v63 }
 0x4bf   : > { %v1365_v4 = vpop.xlane.xlu1 %1364  ;;  %v1435_v5 = vsel %vm1320_vm3, %v4139_v1, 0.0 }
 0x4c0   : > { %v4144_v6 = vpop.eup %3171  ;;  %3181 = vpow2.f32 %v1409_v2  ;;  %v1411_v58 = vmul.f32 1.442695, %v1382_v53  ;;  %v1383_v7 = vsub.f32 %v4086_v0, %v1365_v4  ;;  %1436 = vadd.xlane.f32.xlu1 %v1435_v5 }
 0x4c1   : > { %v1368_v8 = vpop.xlane.xlu0 %1367  ;;  %v1438_v52 = vsel %vm1320_vm3, %v4144_v6, 0.0 }
 0x4c2   : > { %v4149_v9 = vpop.eup %3173  ;;  %3183 = vpow2.f32 %v1411_v58  ;;  %v1413_v10 = vmul.f32 1.442695, %v1383_v7  ;;  %v1384_v57 = vsub.f32 %v4090_v3, %v1368_v8  ;;  %1439 = vadd.xlane.f32.xlu0 %v1438_v52 }
 0x4c3   : > { %v1441_v11 = vsel %vm1320_vm3, %v4149_v9, 0.0  ;;  %v926_v31 = vpop.permute.xlu1 %925 }
 0x4c4   : > { %v4154_v12 = vpop.eup %3175  ;;  %3185 = vpow2.f32 %v1413_v10  ;;  %v1415_v13 = vmul.f32 1.442695, %v1384_v57  ;;  %1442 = vadd.xlane.f32.xlu1 %v1441_v11 }
 0x4c5   : > { %v1444_v0 = vsel %vm1320_vm3, %v4154_v12, 0.0  ;;  %v928_v32 = vpop.permute.xlu0 %927 }
 0x4c6   : > { %v4158_v14 = vpop.eup %3177  ;;  %3187 = vpow2.f32 %v1415_v13  ;;  %1445 = vadd.xlane.f32.xlu0 %v1444_v0 }
 0x4c7   : > { %v1447_v15 = vsel %vm1320_vm3, %v4158_v14, 0.0  ;;  %v932_v34 = vpop.permute.xlu1 %931 }
 0x4c8   : > { %v4162_v3 = vpop.eup %3179  ;;  %1448 = vadd.xlane.f32.xlu1 %v1447_v15 }
 0x4c9   : > { %v1450_v16 = vsel %vm1320_vm3, %v4162_v3, 0.0 }
 0x4ca   : > { %v4166_v18 = vpop.eup %3181  ;;  %1451 = vadd.xlane.f32.xlu0 %v1450_v16 }
 0x4cb   : > { %v1453_v22 = vsel %vm1320_vm3, %v4166_v18, 0.0  ;;  %v4186_v37 = vpop.permute.xlu1 %933 }
 0x4cc   : > { %v4170_v21 = vpop.eup %3183  ;;  %1454 = vadd.xlane.f32.xlu1 %v1453_v22 }
 0x4cd   : > { %v1456_v25 = vsel %vm1320_vm3, %v4170_v21, 0.0 }
 0x4ce   : > { %v4174_v27 = vpop.eup %3185  ;;  %1457 = vadd.xlane.f32.xlu0 %v1456_v25 }
 0x4cf   : > { %v1459_v28 = vsel %vm1320_vm3, %v4174_v27, 0.0 }
 0x4d0   : > { %v4178_v29 = vpop.eup %3187  ;;  %1460 = vadd.xlane.f32.xlu1 %v1459_v28 }
 0x4d1   : > { %v1462_v30 = vsel %vm1320_vm3, %v4178_v29, 0.0 }
 0x4d2   : > { %1463 = vadd.xlane.f32.xlu0 %v1462_v30 }
 0x4e1   : > { %939 = vrot.lane.b32.xlu1 %v4019_v17, %s3557_s15 }
 0x4e8   : > { %937 = vrot.lane.b32.xlu0 %v4021_v19, %s3557_s15 }
 0x4f6   : > { %v1422_v35 = vpop.xlane.xlu0 %1421 }
 0x4f7   : > { %3189 = vrcp.f32 %v1422_v35 }
 0x4fa   : > { %v1428_v39 = vpop.xlane.xlu0 %1427 }
 0x4fc   : > { %v1419_v42 = vpop.xlane.xlu1 %1418 }
 0x4fd   : > { %3191 = vrcp.f32 %v1419_v42 }
 0x4fe   : > { %3193 = vrcp.f32 %v1428_v39 }
 0x500   : > { %v1425_v43 = vpop.xlane.xlu1 %1424 }
 0x501   : > { %3195 = vrcp.f32 %v1425_v43  ;;  %v3190_v44 = vpop.eup %3189  ;;  %v3134_v43 = vld [vmem:[%s3921_s16 + $0x8] sm:$0xff]  }
 0x502   : > { %v1482_v17 = vmul.f32 %v3190_v44, %v4106_v20  ;;  %v3135_v44 = vld [vmem:[%s3921_s16 + $0x10] sm:$0xff]  }
 0x507   : > { %v3192_v47 = vpop.eup %3191 }
 0x508   : > { %v1481_v48 = vmul.f32 %v3192_v47, %v4112_v24  ;;  %v3194_v19 = vpop.eup %3193 }
 0x509   : > { %v1484_v50 = vmul.f32 %v3194_v19, %v4110_v23 }
 0x50a   : > { %v1497_v49 = vpack.c.bf16 %v1482_v17, %v1481_v48  ;;  %v3136_v48 = vld [vmem:[%s3921_s16 + $0x18] sm:$0xff]  }
 0x50b   : > { %v3196_v36 = vpop.eup %3195 }
 0x50c   : > { %v1483_v51 = vmul.f32 %v3196_v36, %v4118_v26  ;;  %2835 = vmatmul.mubr.msk.bf16.vlgmr.msra.gmra.mrb[16].mxu1 %vm1320_vm3, %v1497_v49 }
 0x50d   : > { %2845 = vmatpush3.bf16.msra.mxu1 %v926_v31  ;;  %2846 = vmatprep.mubr.msk.bf16.mxu1 %vm3554_vm1, %v3553_v38 }
 0x50e   : > { %v1498_v54 = vpack.c.bf16 %v1484_v50, %v1483_v51  ;;  %2856 = vmatprep.subr.bf16.mxu1 %v3553_v38  ;;  %v3137_v50 = vld [vmem:[%s3921_s16 + $0x20] sm:$0xff]  }
 0x510   : > { %2841 = vmatmul.mubr.msk.bf16.vlgmr.msra.gmra.mrb[28].mxu0 %vm1320_vm3, %v1498_v54  ;;  %v3138_v54 = vld [vmem:[%s3921_s16 + $0x28] sm:$0xff]  }
 0x511   : > { %2851 = vmatpush3.bf16.msra.mxu0 %v928_v32  ;;  %2852 = vmatprep.mubr.msk.bf16.mxu0 %vm3554_vm1, %v3553_v38 }
 0x512   : > { %2862 = vmatprep.subr.bf16.mxu0 %v3553_v38 }
 0x544   : > { %v1431_v20 = vpop.xlane.xlu1 %1430 }
 0x545   : > { %3197 = vrcp.f32 %v1431_v20 }
 0x546   : > { %v1434_v23 = vpop.xlane.xlu0 %1433 }
 0x547   : > { %3199 = vrcp.f32 %v1434_v23 }
 0x54d   : > { %v1437_v24 = vpop.xlane.xlu1 %1436 }
 0x54e   : > { %3201 = vrcp.f32 %v1437_v24 }
 0x54f   : > { %v3198_v26 = vpop.eup %3197  ;;  %v1440_v46 = vpop.xlane.xlu0 %1439 }
 0x550   : > { %3203 = vrcp.f32 %v1440_v46  ;;  %v1485_v56 = vmul.f32 %v3198_v26, %v4127_v33 }
 0x551   : > { %v3200_v55 = vpop.eup %3199  ;;  %v1443_v41 = vpop.xlane.xlu1 %1442 }
 0x552   : > { %v1486_v59 = vmul.f32 %v3200_v55, %v4132_v40  ;;  %3205 = vrcp.f32 %v1443_v41  ;;  %v3139_v55 = vld [vmem:[%s3921_s16 + $0x30] sm:$0xff]  }
 0x553   : > { %v1446_v45 = vpop.xlane.xlu0 %1445 }
 0x554   : > { %3207 = vrcp.f32 %v1446_v45  ;;  %v1499_v60 = vpack.c.bf16 %v1486_v59, %v1485_v56 }
 0x555   : > { %v1449_v61 = vpop.xlane.xlu1 %1448 }
 0x556   : > { %3209 = vrcp.f32 %v1449_v61  ;;  %2847 = vmatmul.mubr.msk.bf16.vlgmr.msra.gmra.mrb[20].mxu1 %vm1320_vm3, %v1499_v60  ;;  %v3140_v61 = vld [vmem:[%s3921_s16 + $0x38] sm:$0xff]  }
 0x557   : > { %2857 = vmatpush3.bf16.msra.mxu1 %v932_v34  ;;  %v1452_v62 = vpop.xlane.xlu0 %1451  ;;  %2858 = vmatprep.mubr.msk.bf16.mxu1 %vm3554_vm1, %v3553_v38 }
 0x558   : > { %v3202_v63 = vpop.eup %3201  ;;  %3211 = vrcp.f32 %v1452_v62  ;;  %2868 = vmatprep.subr.bf16.mxu1 %v3553_v38 }
 0x559   : > { %v1455_v33 = vpop.xlane.xlu1 %1454  ;;  %v1487_v40 = vmul.f32 %v3202_v63, %v4139_v1 }
 0x55a   : > { %v3204_v2 = vpop.eup %3203  ;;  %3213 = vrcp.f32 %v1455_v33 }
 0x55b   : > { %v1488_v53 = vmul.f32 %v3204_v2, %v4144_v6  ;;  %v1458_v4 = vpop.xlane.xlu0 %1457 }
 0x55c   : > { %v3206_v5 = vpop.eup %3205  ;;  %3215 = vrcp.f32 %v1458_v4  ;;  %v3141_v4 = vld [vmem:[%s3923_s23] sm:$0xff]  }
 0x55d   : > { %v1461_v58 = vpop.xlane.xlu1 %1460  ;;  %v1500_v7 = vpack.c.bf16 %v1488_v53, %v1487_v40  ;;  %v1489_v52 = vmul.f32 %v3206_v5, %v4149_v9  ;;  %v3142_v5 = vld [vmem:[%s3923_s23 + $0x8] sm:$0xff]  }
 0x55e   : > { %v3208_v8 = vpop.eup %3207  ;;  %3217 = vrcp.f32 %v1461_v58 }
 0x55f   : > { %v1490_v10 = vmul.f32 %v3208_v8, %v4154_v12  ;;  %2853 = vmatmul.mubr.msk.bf16.vlgmr.msra.gmra.mrb[32].mxu0 %vm1320_vm3, %v1500_v7  ;;  %v1464_v57 = vpop.xlane.xlu0 %1463 }
 0x560   : > { %v3210_v11 = vpop.eup %3209  ;;  %2863 = vmatpush3.bf16.msra.mxu0 %v4186_v37  ;;  %3219 = vrcp.f32 %v1464_v57  ;;  %2864 = vmatprep.mubr.msk.bf16.mxu0 %vm3554_vm1, %v3553_v38  ;;  %v3143_v57 = vld [vmem:[%s3923_s23 + $0x10] sm:$0xff]  }
 0x561   : > { %v1501_v1 = vpack.c.bf16 %v1490_v10, %v1489_v52  ;;  %2874 = vmatprep.subr.bf16.mxu0 %v3553_v38  ;;  %v1491_v13 = vmul.f32 %v3210_v11, %v4158_v14  ;;  %v940_v28 = vpop.permute.xlu1 %939 }
 0x562   : > { %v3212_v6 = vpop.eup %3211 }
 0x563   : > { %v1492_v9 = vmul.f32 %v3212_v6, %v4162_v3  ;;  %2859 = vmatmul.mubr.msk.bf16.vlgmr.msra.gmra.mrb[24].mxu1 %vm1320_vm3, %v1501_v1  ;;  %v938_v12 = vpop.permute.xlu0 %937 }
 0x564   : > { %v3214_v0 = vpop.eup %3213  ;;  %2869 = vmatpush3.bf16.msra.mxu1 %v938_v12  ;;  %2870 = vmatprep.mubr.msk.bf16.mxu1 %vm3554_vm1, %v3553_v38  ;;  %v3146_v12 = vld [vmem:[%s3923_s23 + $0x28] sm:$0xff]  }
 0x565   : > { %v1502_v15 = vpack.c.bf16 %v1492_v9, %v1491_v13  ;;  %v1493_v22 = vmul.f32 %v3214_v0, %v4166_v18  ;;  %v3144_v13 = vld [vmem:[%s3923_s23 + $0x18] sm:$0xff]   ;;  %v3145_v9 = vld [vmem:[%s3923_s23 + $0x20] sm:$0xff]  }
 0x566   : > { %v3216_v16 = vpop.eup %3215 }
 0x567   : > { %v1494_v25 = vmul.f32 %v3216_v16, %v4170_v21  ;;  %2865 = vmatmul.mubr.msk.bf16.vlgmr.msra.gmra.mrb[36].mxu0 %vm1320_vm3, %v1502_v15  ;;  %v3133_v21 = vld [vmem:[%s3921_s16] sm:$0xff]  }
 0x568   : > { %v3218_v14 = vpop.eup %3217  ;;  %2875 = vmatpush3.bf16.msra.mxu0 %v940_v28  ;;  %2876 = vmatprep.mubr.msk.bf16.mxu0 %vm3554_vm1, %v3553_v38 }
 0x569   : > { %v1503_v3 = vpack.c.bf16 %v1494_v25, %v1493_v22  ;;  %v1495_v31 = vmul.f32 %v3218_v14, %v4174_v27  ;;  %2880 = vmatprep.subr.bf16.mxu1 %v3133_v21  ;;  %2900 = vmatprep.subr.bf16.mxu0 %v3141_v4 }
 0x56a   : > { %v3220_v30 = vpop.eup %3219 }
 0x56b   : > { %v1496_v32 = vmul.f32 %v3220_v30, %v4178_v29  ;;  %2871 = vmatmul.mubr.msk.bf16.vlgmr.msra.gmra.mrb[28].mxu1 %vm1320_vm3, %v1503_v3 }
 0x56c   : > { %2881 = vmatpush3.bf16.msra.mxu1 %v3133_v21 }
 0x56d   : > { %v1504_v18 = vpack.c.bf16 %v1496_v32, %v1495_v31  ;;  %2882 = vmatprep.subr.bf16.mxu1 %v3134_v43 }
 0x56f   : > { %2877 = vmatmul.mubr.msk.bf16.vlgmr.msra.gmra.mrb[40].mxu0 %vm1320_vm3, %v1504_v18 }
 0x570   : > { %2883 = vmatpush3.bf16.msra.mxu1 %v3134_v43  ;;  %2901 = vmatpush3.bf16.msra.mxu0 %v3141_v4  ;;  %v3151_v4 = vld [vmem:[%s3937_s5 + $0x10] sm:$0xff]  }
 0x571   : > { %2884 = vmatprep.subr.bf16.mxu1 %v3135_v44  ;;  %2902 = vmatprep.subr.bf16.mxu0 %v3142_v5 }
 0x574   : > { %2885 = vmatpush3.bf16.msra.mxu1 %v3135_v44  ;;  %2903 = vmatpush3.bf16.msra.mxu0 %v3142_v5  ;;  %v3152_v5 = vld [vmem:[%s3937_s5 + $0x18] sm:$0xff]  }
 0x575   : > { %2886 = vmatprep.subr.bf16.mxu1 %v3136_v48  ;;  %2904 = vmatprep.subr.bf16.mxu0 %v3143_v57 }
 0x578   : > { %2887 = vmatpush3.bf16.msra.mxu1 %v3136_v48  ;;  %2905 = vmatpush3.bf16.msra.mxu0 %v3143_v57 }
 0x579   : > { %2888 = vmatprep.subr.bf16.mxu1 %v3137_v50  ;;  %2906 = vmatprep.subr.bf16.mxu0 %v3144_v13 }
 0x57c   : > { %2889 = vmatpush3.bf16.msra.mxu1 %v3137_v50  ;;  %2907 = vmatpush3.bf16.msra.mxu0 %v3144_v13 }
 0x57d   : > { %2890 = vmatprep.subr.bf16.mxu1 %v3138_v54  ;;  %2908 = vmatprep.subr.bf16.mxu0 %v3145_v9 }
 0x580   : > { %2891 = vmatpush3.bf16.msra.mxu1 %v3138_v54  ;;  %2909 = vmatpush3.bf16.msra.mxu0 %v3145_v9 }
 0x581   : > { %2892 = vmatprep.subr.bf16.mxu1 %v3139_v55  ;;  %2910 = vmatprep.subr.bf16.mxu0 %v3146_v12 }
 0x584   : > { %2893 = vmatpush3.bf16.msra.mxu1 %v3139_v55  ;;  %2911 = vmatpush3.bf16.msra.mxu0 %v3146_v12  ;;  %v3237_v55 = vld [vmem:[#allocation14 + $0x18] sm:$0xff] }
 0x585   : > { %2894 = vmatprep.subr.bf16.mxu1 %v3140_v61 }
 0x588   : > { %2895 = vmatpush3.bf16.msra.mxu1 %v3140_v61 }
 0x5df   : > { %v4230_v34 = vpop.f32.mrb[16].mxu1 }
 0x5e0   : > { %v2836_v38 = vpop.f32.mrb[17].mxu1 }
 0x5e1   : > { %v4232_v35 = vpop.f32.mrb[18].mxu1 }
 0x5e2   : > { %v2837_v37 = vpop.f32.mrb[19].mxu1 }
 0x5e3   : > { %v4234_v27 = vpop.f32.mrb[28].mxu0 }
 0x5e4   : > { %v2842_v39 = vpop.f32.mrb[29].mxu0 }
 0x5e5   : > { %v4236_v29 = vpop.f32.mrb[30].mxu0 }
 0x5e6   : > { %v2843_v42 = vpop.f32.mrb[31].mxu0 }
 0x629   : > { %v1630_v47 = vpop.f32.mrb[20].mxu1 }
 0x62a   : > { %v2848_v17 = vpop.f32.mrb[21].mxu1 }
 0x62b   : > { %v1633_v19 = vpop.f32.mrb[22].mxu1 }
 0x62c   : > { %v3071_v49 = vpack.i.bf16 %v1633_v19, %v1630_v47  ;;  %v2849_v36 = vpop.f32.mrb[23].mxu1 }
 0x62e   : > { %3072 = vrot.lane.b32.xlu0 %v3071_v49, %s3557_s15 }
 0x632   : > { %v1674_v51 = vpop.f32.mrb[32].mxu0 }
 0x633   : > { %v2854_v20 = vpop.f32.mrb[33].mxu0 }
 0x634   : > { %v1677_v23 = vpop.f32.mrb[34].mxu0 }
 0x635   : > { %v3076_v24 = vpack.i.bf16 %v1677_v23, %v1674_v51  ;;  %v2855_v26 = vpop.f32.mrb[35].mxu0 }
 0x636   : > { %v1718_v46 = vpop.f32.mrb[24].mxu1 }
 0x637   : > { %v2860_v41 = vpop.f32.mrb[25].mxu1  ;;  %3077 = vrot.lane.b32.xlu1 %v3076_v24, %s3557_s15  ;;  %v3147_v24 = vld [vmem:[%s3923_s23 + $0x30] sm:$0xff]  }
 0x638   : > { %v1721_v56 = vpop.f32.mrb[26].mxu1  ;;  %2912 = vmatprep.subr.bf16.mxu0 %v3147_v24 }
 0x639   : > { %v3081_v59 = vpack.i.bf16 %v1721_v56, %v1718_v46  ;;  %v2861_v45 = vpop.f32.mrb[27].mxu1  ;;  %2913 = vmatpush3.bf16.msra.mxu0 %v3147_v24 }
 0x63a   : > { %v1762_v60 = vpop.f32.mrb[36].mxu0 }
 0x63b   : > { %3082 = vrot.lane.b32.xlu0 %v3081_v59, %s3556_s12  ;;  %v2866_v62 = vpop.f32.mrb[37].mxu0  ;;  %v3238_v59 = vld [vmem:[#allocation14] sm:$0xff] }
 0x63c   : > { %v1765_v63 = vpop.f32.mrb[38].mxu0  ;;  %v3240_v62 = vld [vmem:[#allocation14 + $0x10] sm:$0xff] }
 0x63d   : > { %v3086_v33 = vpack.i.bf16 %v1765_v63, %v1762_v60  ;;  %v2867_v2 = vpop.f32.mrb[39].mxu0  ;;  %v3239_v60 = vld [vmem:[#allocation14 + $0x8] sm:$0xff] }
 0x63e   : > { %v1806_v40 = vpop.f32.mrb[28].mxu1 }
 0x63f   : > { %v2872_v53 = vpop.f32.mrb[29].mxu1  ;;  %3087 = vrot.lane.b32.xlu1 %v3086_v33, %s3556_s12 }
 0x640   : > { %v1809_v58 = vpop.f32.mrb[30].mxu1  ;;  %v3150_v53 = vld [vmem:[%s3937_s5 + $0x8] sm:$0xff]  }
 0x641   : > { %v3091_v7 = vpack.i.bf16 %v1809_v58, %v1806_v40  ;;  %v2873_v8 = vpop.f32.mrb[31].mxu1  ;;  %v3149_v40 = vld [vmem:[%s3937_s5] sm:$0xff]  }
 0x642   : > { %v1850_v52 = vpop.f32.mrb[40].mxu0  ;;  %2920 = vmatprep.subr.bf16.mxu1 %v3149_v40  ;;  %v3153_v58 = vld [vmem:[%s3937_s5 + $0x20] sm:$0xff]   ;;  %v3155_v8 = vld [vmem:[%s3937_s5 + $0x30] sm:$0xff]  }
 0x643   : > { %3092 = vrot.lane.b32.xlu0 %v3091_v7, %s3555_s30  ;;  %v2878_v10 = vpop.f32.mrb[41].mxu0  ;;  %v3154_v7 = vld [vmem:[%s3937_s5 + $0x28] sm:$0xff]  }
 0x644   : > { %v1853_v11 = vpop.f32.mrb[42].mxu0 }
 0x645   : > { %v3096_v1 = vpack.i.bf16 %v1853_v11, %v1850_v52  ;;  %v2879_v6 = vpop.f32.mrb[43].mxu0  ;;  %v3156_v52 = vld [vmem:[%s3937_s5 + $0x38] sm:$0xff]  }
 0x647   : > { %3097 = vrot.lane.b32.xlu1 %v3096_v1, %s3555_s30 }
 0x6a0   : > { %v3073_v0 = vpop.permute.xlu0 %3072 }
 0x6a1   : > { %v3075_v22 = vunpack.i.h.bf16 %v3073_v0  ;;  %v3074_v25 = vunpack.i.l.bf16 %v3073_v0 }
 0x6a3   : > { %v1906_v30 = vsel %vm943_vm2, %v4232_v35, %v3075_v22  ;;  %v1905_v31 = vsel %vm943_vm2, %v4230_v34, %v3074_v25 }
 0x6a9   : > { %v3078_v15 = vpop.permute.xlu1 %3077 }
 0x6aa   : > { %v3080_v18 = vunpack.i.h.bf16 %v3078_v15  ;;  %v3079_v21 = vunpack.i.l.bf16 %v3078_v15 }
 0x6ac   : > { %v1908_v48 = vsel %vm943_vm2, %v4236_v29, %v3080_v18  ;;  %v1907_v19 = vsel %vm943_vm2, %v4234_v27, %v3079_v21  ;;  %v3148_v29 = vld [vmem:[%s3923_s23 + $0x38] sm:$0xff]  }
 0x6ad   : > { %v3083_v16 = vpop.permute.xlu0 %3082  ;;  %2914 = vmatprep.subr.bf16.mxu0 %v3148_v29 }
 0x6ae   : > { %v3085_v28 = vunpack.i.h.bf16 %v3083_v16  ;;  %v3084_v14 = vunpack.i.l.bf16 %v3083_v16  ;;  %2915 = vmatpush3.bf16.msra.mxu0 %v3148_v29 }
 0x6b0   : > { %v1910_v39 = vsel %vm1909_vm4, %v1905_v31, %v3084_v14  ;;  %v1911_v42 = vsel %vm1909_vm4, %v1906_v30, %v3085_v28 }
 0x6b1   : > { %v3088_v3 = vpop.permute.xlu1 %3087 }
 0x6b2   : > { %v3090_v43 = vunpack.i.h.bf16 %v3088_v3  ;;  %v3089_v44 = vunpack.i.l.bf16 %v3088_v3 }
 0x6b4   : > { %v1913_v50 = vsel %vm1909_vm4, %v1908_v48, %v3090_v43  ;;  %v1912_v51 = vsel %vm1909_vm4, %v1907_v19, %v3089_v44 }
 0x6b5   : > { %v3093_v32 = vpop.permute.xlu0 %3092 }
 0x6b6   : > { %v3095_v38 = vunpack.i.h.bf16 %v3093_v32  ;;  %v3094_v37 = vunpack.i.l.bf16 %v3093_v32 }
 0x6b8   : > { %v1915_v47 = vsel %vm1914_vm5, %v1910_v39, %v3094_v37  ;;  %v1916_v35 = vsel %vm1914_vm5, %v1911_v42, %v3095_v38 }
 0x6b9   : > { %v3098_v17 = vpop.permute.xlu1 %3097  ;;  %v1919_v34 = vpack.c.bf16 %v1916_v35, %v1915_v47 }
 0x6ba   : > { %v3100_v49 = vunpack.i.h.bf16 %v3098_v17  ;;  %v3099_v36 = vunpack.i.l.bf16 %v3098_v17 }
 0x6bb   : > { %2896 = vmatprep.mubr.bf16.mxu1 %v1919_v34 }
 0x6bc   : > { %v1918_v54 = vsel %vm1914_vm5, %v1913_v50, %v3100_v49  ;;  %v1917_v20 = vsel %vm1914_vm5, %v1912_v51, %v3099_v36 }
 0x6bd   : > { %v1920_v23 = vpack.c.bf16 %v1918_v54, %v1917_v20 }
 0x6bf   : > { %2897 = vmatmul.mubr.bf16.vlgmr.msra.gmra.mrb[32].mxu1 %v1920_v23 }
 0x6c0   : > { %2921 = vmatpush3.bf16.msra.mxu1 %v3149_v40 }
 0x6c1   : > { %2922 = vmatprep.subr.bf16.mxu1 %v3150_v53 }
 0x6c4   : > { %2923 = vmatpush3.bf16.msra.mxu1 %v3150_v53 }
 0x6c5   : > { %2924 = vmatprep.subr.bf16.mxu1 %v3151_v4 }
 0x6c8   : > { %2925 = vmatpush3.bf16.msra.mxu1 %v3151_v4 }
 0x6c9   : > { %2926 = vmatprep.subr.bf16.mxu1 %v3152_v5 }
 0x6cc   : > { %2927 = vmatpush3.bf16.msra.mxu1 %v3152_v5 }
 0x6cd   : > { %2928 = vmatprep.subr.bf16.mxu1 %v3153_v58 }
 0x6d0   : > { %2929 = vmatpush3.bf16.msra.mxu1 %v3153_v58 }
 0x6d1   : > { %2930 = vmatprep.subr.bf16.mxu1 %v3154_v7 }
 0x6d4   : > { %2931 = vmatpush3.bf16.msra.mxu1 %v3154_v7 }
 0x6d5   : > { %2932 = vmatprep.subr.bf16.mxu1 %v3155_v8 }
 0x6d8   : > { %2933 = vmatpush3.bf16.msra.mxu1 %v3155_v8 }
 0x6d9   : > { %2934 = vmatprep.subr.bf16.mxu1 %v3156_v52 }
 0x6dc   : > { %2935 = vmatpush3.bf16.msra.mxu1 %v3156_v52 }
 0x792   : > { %v2898_v27 = vpop.f32.mrb[32].mxu1 }
 0x793   : > { %v2019_v26 = vpop.f32.mrb[33].mxu1  ;;  %v4281_v63 = vadd.f32 %v3240_v62, %v2898_v27 }
 0x794   : > { %v2899_v46 = vpop.f32.mrb[34].mxu1  ;;  %v4277_v45 = vadd.f32 %v3238_v59, %v2019_v26 }
 0x795   : > { %v4275_v41 = vadd.f32 %v3237_v55, %v2899_v46  ;;  %v2022_v56 = vpop.f32.mrb[35].mxu1 }
 0x796   : > { %v4279_v61 = vadd.f32 %v3239_v60, %v2022_v56 }
 0x797   : > { %v2039_v2 = vpack.c.bf16 %v4275_v41, %v4281_v63 }
 0x798   : > { %v2038_v33 = vpack.c.bf16 %v4279_v61, %v4277_v45 }
 0x79a   : > { %2916 = vmatprep.mubr.bf16.mxu0 %v2038_v33 }
 0x79b   : > { %2917 = vmatmul.mubr.bf16.vlgmr.msra.gmra.mrb[44].mxu0 %v2039_v2 }
 0x86e   : > { %v4295_v10 = vpop.f32.mrb[44].mxu0 }
 0x86f   : > { %v4298_v57 = vmul.f32 0.70710677, %v4295_v10  ;;  %v4300_v11 = vpop.f32.mrb[45].mxu0 }
 0x870   : > { %v4303_v1 = vmul.f32 0.70710677, %v4300_v11  ;;  %v4305_v6 = vpop.f32.mrb[46].mxu0 }
 0x871   : > { %v2171_v13 = vand.u32 2147483647, %v4298_v57  ;;  %v4309_v9 = vmul.f32 0.70710677, %v4305_v6  ;;  %v4312_v0 = vpop.f32.mrb[47].mxu0  ;;  %vm2163_vm6 = vcmp.ge.f32.partialorder %v4298_v57, 0.0 }
 0x872   : > { %v2169_v12 = vand.u32 2147483647, %v4303_v1  ;;  %v4316_v28 = vmul.f32 0.70710677, %v4312_v0  ;;  %vm2161_vm7 = vcmp.ge.f32.partialorder %v4303_v1, 0.0 }
 0x873   : > { %v2175_v15 = vmul.f32 0.3275911, %v2171_v13  ;;  %v2172_v22 = vand.u32 2147483647, %v4309_v9  ;;  %v2227_v21 = vsub.f32 0.0, %v2171_v13  ;;  %vm2164_vm8 = vcmp.ge.f32.partialorder %v4309_v9, 0.0 }
 0x874   : > { %v2173_v16 = vmul.f32 0.3275911, %v2169_v12  ;;  %v2170_v30 = vand.u32 2147483647, %v4316_v28  ;;  %v2225_v38 = vsub.f32 0.0, %v2169_v12  ;;  %vm2162_vm9 = vcmp.ge.f32.partialorder %v4316_v28, 0.0 }
 0x875   : > { %v2179_v25 = vadd.f32 1.0, %v2175_v15  ;;  %v2176_v3 = vmul.f32 0.3275911, %v2172_v22  ;;  %v2231_v39 = vmul.f32 %v2227_v21, %v2171_v13  ;;  %v2228_v42 = vsub.f32 0.0, %v2172_v22 }
 0x876   : > { %v2177_v14 = vadd.f32 1.0, %v2173_v16  ;;  %v2174_v32 = vmul.f32 0.3275911, %v2170_v30  ;;  %v2229_v47 = vmul.f32 %v2225_v38, %v2169_v12  ;;  %v2226_v17 = vsub.f32 0.0, %v2170_v30 }
 0x877   : > { %3221 = vrcp.f32 %v2179_v25  ;;  %v2180_v31 = vadd.f32 1.0, %v2176_v3  ;;  %v2237_v19 = vmul.f32 1.442695, %v2231_v39  ;;  %v2232_v36 = vmul.f32 %v2228_v42, %v2172_v22 }
 0x878   : > { %3223 = vrcp.f32 %v2177_v14  ;;  %v2178_v18 = vadd.f32 1.0, %v2174_v32  ;;  %v2233_v51 = vmul.f32 1.442695, %v2229_v47  ;;  %v2230_v24 = vmul.f32 %v2226_v17, %v2170_v30 }
 0x879   : > { %3225 = vrcp.f32 %v2180_v31  ;;  %v2239_v55 = vmul.f32 1.442695, %v2232_v36  ;;  %v3558_v47 = vmov -1.0   ;;  %v2156_v9 = vmul.f32 0.5, %v4305_v6  ;;  %v2669_v6 = vld [vmem:[%s510_s22] ss:$0 sm:$0xff] }
 0x87a   : > { %3227 = vrcp.f32 %v2178_v18  ;;  %v2235_v33 = vmul.f32 1.442695, %v2230_v24  ;;  %v2165_v57 = vsel %vm2161_vm7, 1.0, %v3558_v47  ;;  %v2166_v24 = vsel %vm2162_vm9, 1.0, %v3558_v47 }
 0x87b   : > { %3229 = vpow2.f32 %v2237_v19  ;;  %v2154_v28 = vmul.f32 0.5, %v4312_v0 }
 0x87c   : > { %3231 = vpow2.f32 %v2233_v51  ;;  %v2168_v51 = vsel %vm2164_vm8, 1.0, %v3558_v47 }
 0x87d   : > { %3233 = vpow2.f32 %v2239_v55 }
 0x87e   : > { %3235 = vpow2.f32 %v2235_v33 }
 0x881   : > { %v3222_v37 = vpop.eup %3221 }
 0x882   : > { %v3224_v43 = vpop.eup %3223  ;;  %v2191_v44 = vmul.f32 1.0614054, %v3222_v37 }
 0x883   : > { %v2189_v35 = vmul.f32 1.0614054, %v3224_v43  ;;  %v3226_v48 = vpop.eup %3225 }
 0x884   : > { %v2195_v34 = vadd.f32 -1.4531521, %v2191_v44  ;;  %v2192_v54 = vmul.f32 1.0614054, %v3226_v48  ;;  %v3228_v20 = vpop.eup %3227 }
 0x885   : > { %v2193_v49 = vadd.f32 -1.4531521, %v2189_v35  ;;  %v2190_v26 = vmul.f32 1.0614054, %v3228_v20  ;;  %v3230_v14 = vpop.eup %3229  ;;  %v2167_v35 = vsel %vm2163_vm6, 1.0, %v3558_v47 }
 0x886   : > { %v2199_v50 = vmul.f32 %v3222_v37, %v2195_v34  ;;  %v2196_v27 = vadd.f32 -1.4531521, %v2192_v54  ;;  %v3232_v30 = vpop.eup %3231 }
 0x887   : > { %v2197_v23 = vmul.f32 %v3224_v43, %v2193_v49  ;;  %v2194_v60 = vadd.f32 -1.4531521, %v2190_v26  ;;  %v3234_v44 = vpop.eup %3233  ;;  %v2153_v26 = vmul.f32 0.5, %v4300_v11 }
 0x888   : > { %v2203_v29 = vadd.f32 1.4214138, %v2199_v50  ;;  %v2200_v59 = vmul.f32 %v3226_v48, %v2196_v27  ;;  %v3236_v19 = vpop.eup %3235 }
 0x889   : > { %v2201_v46 = vadd.f32 1.4214138, %v2197_v23  ;;  %v2198_v53 = vmul.f32 %v3228_v20, %v2194_v60  ;;  %v2155_v23 = vmul.f32 0.5, %v4295_v10 }
 0x88a   : > { %v2207_v56 = vmul.f32 %v3222_v37, %v2203_v29  ;;  %v2204_v40 = vadd.f32 1.4214138, %v2200_v59 }
 0x88b   : > { %v2205_v62 = vmul.f32 %v3224_v43, %v2201_v46  ;;  %v2202_v7 = vadd.f32 1.4214138, %v2198_v53 }
 0x88c   : > { %v2211_v2 = vadd.f32 -0.28449672, %v2207_v56  ;;  %v2208_v58 = vmul.f32 %v3226_v48, %v2204_v40 }
 0x88d   : > { %v2209_v4 = vadd.f32 -0.28449672, %v2205_v62  ;;  %v2206_v12 = vmul.f32 %v3228_v20, %v2202_v7 }
 0x88e   : > { %v2215_v5 = vmul.f32 %v3222_v37, %v2211_v2  ;;  %v2212_v13 = vadd.f32 -0.28449672, %v2208_v58 }
 0x88f   : > { %v2213_v8 = vmul.f32 %v3224_v43, %v2209_v4  ;;  %v2210_v25 = vadd.f32 -0.28449672, %v2206_v12 }
 0x890   : > { %v2219_v52 = vadd.f32 0.2548296, %v2215_v5  ;;  %v2216_v22 = vmul.f32 %v3226_v48, %v2212_v13 }
 0x891   : > { %v2217_v15 = vadd.f32 0.2548296, %v2213_v8  ;;  %v2214_v18 = vmul.f32 %v3228_v20, %v2210_v25 }
 0x892   : > { %v2223_v16 = vmul.f32 %v3222_v37, %v2219_v52  ;;  %v2220_v32 = vadd.f32 0.2548296, %v2216_v22 }
 0x893   : > { %v2221_v3 = vmul.f32 %v3224_v43, %v2217_v15  ;;  %v2218_v42 = vadd.f32 0.2548296, %v2214_v18 }
 0x894   : > { %v2243_v31 = vmul.f32 %v3230_v14, %v2223_v16  ;;  %v2224_v39 = vmul.f32 %v3226_v48, %v2220_v32 }
 0x895   : > { %v2241_v21 = vmul.f32 %v3232_v30, %v2221_v3  ;;  %v2222_v34 = vmul.f32 %v3228_v20, %v2218_v42 }
 0x896   : > { %v2247_v38 = vsub.f32 1.0, %v2243_v31  ;;  %v2244_v43 = vmul.f32 %v3234_v44, %v2224_v39 }
 0x897   : > { %v2245_v37 = vsub.f32 1.0, %v2241_v21  ;;  %v2242_v50 = vmul.f32 %v3236_v19, %v2222_v34 }
 0x898   : > { %v2251_v17 = vmul.f32 %v2247_v38, %v2167_v35  ;;  %v2248_v36 = vsub.f32 1.0, %v2244_v43 }
 0x899   : > { %v2249_v49 = vmul.f32 %v2245_v37, %v2165_v57  ;;  %v2246_v54 = vsub.f32 1.0, %v2242_v50 }
 0x89a   : > { %v2255_v1 = vadd.f32 1.0, %v2251_v17  ;;  %v2252_v48 = vmul.f32 %v2248_v36, %v2168_v51 }
 0x89b   : > { %v2253_v29 = vadd.f32 1.0, %v2249_v49  ;;  %v2250_v20 = vmul.f32 %v2246_v54, %v2166_v24 }
 0x89c   : > { %v2256_v27 = vadd.f32 1.0, %v2252_v48  ;;  %v2259_v46 = vmul.f32 %v2255_v1, %v2155_v23 }
 0x89d   : > { %v2254_v56 = vadd.f32 1.0, %v2250_v20  ;;  %v2257_v59 = vmul.f32 %v2253_v29, %v2153_v26 }
 0x89e   : > { %v2260_v55 = vmul.f32 %v2256_v27, %v2156_v9 }
 0x89f   : > { %v2258_v62 = vmul.f32 %v2254_v56, %v2154_v28 }
 0x8a0   : > { %v2262_v60 = vpack.c.bf16 %v2260_v55, %v2259_v46 }
 0x8a1   : > { %v2261_v33 = vpack.c.bf16 %v2258_v62, %v2257_v59 }
 0x8a3   : > { %2936 = vmatprep.mubr.bf16.mxu1 %v2261_v33 }
 0x8a4   : > { %2937 = vmatmul.mubr.bf16.vlgmr.msra.gmra.mrb[36].mxu1 %v2262_v60 }
 0x977   : > { %v2938_v10 = vpop.f32.mrb[36].mxu1 }
 0x978   : > { %v2378_v11 = vadd.f32 %v2938_v10, %v4281_v63  ;;  %v2361_v2 = vpop.f32.mrb[37].mxu1 }
 0x979   : > { %v2376_v40 = vadd.f32 %v2361_v2, %v4277_v45  ;;  %v2939_v0 = vpop.f32.mrb[38].mxu1 }
 0x97a   : > { %v2389_v53 = vadd.f32 %v2669_v6, %v2378_v11  ;;  %v2379_v4 = vadd.f32 %v2939_v0, %v4275_v41  ;;  %v2364_v5 = vpop.f32.mrb[39].mxu1 }
 0x97b   : > { %v2387_v58 = vadd.f32 %v2669_v6, %v2376_v40  ;;  %v2377_v7 = vadd.f32 %v2364_v5, %v4279_v61 }
 0x97c   : > { %2393 = vst [vmem:[#allocation14 + $0x10] sm:$0xff] %v2389_v53  ;;  %v2390_v8 = vadd.f32 %v2669_v6, %v2379_v4 }
 0x97d   : > { %2391 = vst [vmem:[#allocation14] sm:$0xff] %v2387_v58  ;;  %v2388_v63 = vadd.f32 %v2669_v6, %v2377_v7 }
 0x97e   : > { %2394 = vst [vmem:[#allocation14 + $0x18] sm:$0xff] %v2390_v8 }
 0x97f   : > { %2392 = vst [vmem:[#allocation14 + $0x8] sm:$0xff] %v2388_v63 }
 0x980   : > { %3458 = shalt.err (!%p3455_p6)
}
 0x981   : > { %s4438_s29 = sld [smem:[#allocation29_spill]] }
 0x987   : > { %s4439_s18 = smov %s4438_s29  ;;  %s3459_s13 = scalar_lea.hbm %s4438_s29, 512 }
 0x988   : > { %p3460_p9 = scmp.ne.s32.totalorder %s4439_s18, %s3459_s13  ;;  %p3465_p12 = scmp.lt.u32.totalorder %s3459_s13, %s4439_s18 }
 0x98a   : > { %p3461_p4 = pnand %p3460_p9, %p2997_p3 }
 0x98c   : > { %p3462_p5 = pneg %p3461_p4 }
 0x98e   : > { %p3467_p10 = pnand %p3465_p12, %p3462_p5 }
 0x990   : > { %3470 = shalt.err (!%p3467_p10)
}
 0x991   : > { %s3560_s23 = smov 128   ;;  %s3561_s8 = smov 8  }
 0x992   : > { %2964 = dma.vmem_to_hbm [thread:$0]  (%p2997_p3), %s2406_s20, 512, %s4439_s18, [#allocation4], %s3560_s23, %s3560_s23, %s3561_s8  }
 0x993   : > { %3512 = dma.done.wait (%p2997_p3), [#allocation4], 512  }
 0x994   : > { %3514 = vsyncadd (%p2997_p3), [#allocation4], 4294966784 }
 0x995 PF: > { %s4440_s3 = sld [smem:[#allocation22_spill]]  ;;  %s4441_s22 = sld [smem:[#allocation20_spill]] }
 0x996   : > { %s4442_s29 = sld [smem:[#allocation24_spill]]  ;;  %s4443_s30 = sld [smem:[#allocation21_spill]] }
 0x997   : > { %s4444_s9 = sld [smem:[#allocation23_spill]]  ;;  %s4445_s27 = smov %s3521_s28 }
 0x99b   : > { %s27_s10 = sadd.s32 1, %s4440_s3   ;;  %s4446_s28 = smov %s4441_s22 }
 0x99c   : > { %p24_p8 = scmp.ge.s32.totalorder %s27_s10, 4  }
 0x99e   :  { %26 = sbr.rel (!%p24_p8) target bundleno = 15 (0xf), region = 146 }
 0x9a5   :  { %2421 = vsyncpa [#allocation3], 1 }
 0x9a6   :  { %2423 = vsyncpa [#allocation3 + $0x1], 1 }
 0x9a7   :  { %2424 = vsyncpa [#allocation6], 1 }
 0x9a8   :  { %2425 = vsyncpa [#allocation9], 1 }
 0x9a9   :  { %2427 = vsyncpa [#allocation9 + $0x1], 1 }
 0x9aa   :  { %2428 = vsyncpa [#allocation12], 1 }
 0x9ab   :  { %2430 = vsyncpa [#allocation12 + $0x1], 1 }
 0x9ac   :  { %2431 = vsyncpa [#allocation4], 1 }
 0x9ad   :  { %2433 = vsyncpa [#allocation4 + $0x1], 1 }

</bundles_post_ra>
